<compile_context>
chip_gen: v7x
topology: tpu7x:2x2x1
jax: 0.10.0
libtpu: 0.0.40
codegen_flags: <defaults>
</compile_context>

<pallas_src>
import math

import jax
import jax.numpy as jnp
from jax import lax
from jax.experimental import pallas as pl
from jax.experimental.pallas import tpu as pltpu


# ---------------------------------------------------------------------------
# Sizes (identical arithmetic to the PyTorch FullyConnected.__init__)
# ---------------------------------------------------------------------------

def fc_sizes(num_layers, dim_input, dim_output):
    factor = pow(dim_input / dim_output, 1.0 / num_layers)
    return [round(dim_input / pow(factor, i)) for i in range(num_layers + 1)]


D_IN = 128          # feature width of activations
H_PAD = 128         # padded hidden width for classifier layers (real 37, 10)
C_PAD = 128         # padded classifier output lanes (real 3)
E_H_PAD = 256       # padded hidden width for element nets (real 181 / 132 / 32)
E_O_PAD = 256       # padded element output lanes (real 256 / 136 / 8)
N_CLS = 3           # real classifier output dim
_UNROLL_MAX = 32    # fully unroll the in-kernel node loop up to this many visits

CLS_SIZES = fc_sizes(3, 128, 3)               # [128, 37, 10, 3]
ELEM_SIZES = {
    0: fc_sizes(2, 128, 128 + 128),           # split:   [128, 181, 256]
    1: fc_sizes(2, 128, 128 + 8),             # similar: [128, 132, 136]
    2: fc_sizes(2, 128, 8),                   # shape:   [128,  32,   8]
}


# ---------------------------------------------------------------------------
# Kernel helpers
# ---------------------------------------------------------------------------

def _prelu(h, alpha):
    # nn.PReLU() with a single learnable scalar; padded lanes are exactly 0 so
    # PReLU(0)=0 keeps zero-padding exact.
    return jnp.where(h > 0, h, alpha * h)


def _slot_ds(slot, bp):
    """Sublane slice for ring slot `slot` (static Python int or traced int32)."""
    if isinstance(slot, int):
        return pl.ds(slot * bp, bp)
    return pl.ds(pl.multiple_of(slot * bp, bp), bp)


# ---------------------------------------------------------------------------
# Fused tree-traversal + deferred batched classifier kernel (single invocation)
# ---------------------------------------------------------------------------

def _decoder_tree_kernel(cls_ref, lslot_ref, rslot_ref,        # SMEM schedule (n,)
                         x_ref,                                 # (bp, 128) f32 root input
                         w1c_ref, b1c_ref, w2c_ref, b2c_ref,    # classifier weights (bf16)/biases(f32)
                         w3c_ref, b3c_ref, ac_ref,
                         w1e_ref, b1e_ref, w2e_ref, b2e_ref, ae_ref,  # stacked element nets
                         cls_out_ref,                           # (n*bp, C_PAD) f32 softmax
                         elem_out_ref,                          # (n, bp, E_O_PAD) f32
                         act_ref):                              # ((n+1)*bp, 128) f32 activation ring
    n = cls_ref.shape[0]
    bp = x_ref.shape[0]

    # Visit slot 0 = tree root: seed its input activation with x.
    act_ref[_slot_ds(0, bp), :] = x_ref[...]

    # ---- sequential element-net traversal (only thing on the dependency path) ----
    def node_body(p):
        c = cls_ref[p]
        x16 = act_ref[_slot_ds(p, bp), :].astype(jnp.bfloat16)
        h = jnp.dot(x16, w1e_ref[c], preferred_element_type=jnp.float32) + b1e_ref[c]
        h = _prelu(h, ae_ref[c])
        out = jnp.dot(h.astype(jnp.bfloat16), w2e_ref[c],
                      preferred_element_type=jnp.float32) + b2e_ref[c]
        elem_out_ref[p] = out
        # Branch-free child routing: nodes without a left/right child have their
        # slot pointed at the trash slot (index n) by the host-side schedule.
        act_ref[_slot_ds(lslot_ref[p], bp), :] = out[:, 0:D_IN]
        act_ref[_slot_ds(rslot_ref[p], bp), :] = out[:, D_IN:2 * D_IN]

    if n <= _UNROLL_MAX:
        for p in range(n):          # fully static unroll for small trees
            node_body(p)
    else:
        def loop_body(p, carry):
            node_body(p)
            return carry
        lax.fori_loop(0, n, loop_body, 0)

    # ---- deferred, batched node_classifier over ALL node input activations ----
    # Linear -> PReLU -> Linear -> PReLU -> Linear -> Softmax, M = n*bp rows.
    acts16 = act_ref[pl.ds(0, n * bp), :].astype(jnp.bfloat16)
    h = jnp.dot(acts16, w1c_ref[...], preferred_element_type=jnp.float32) + b1c_ref[...]
    h = _prelu(h, ac_ref[0])
    h = jnp.dot(h.astype(jnp.bfloat16), w2c_ref[...],
                preferred_element_type=jnp.float32) + b2c_ref[...]
    h = _prelu(h, ac_ref[1])
    logits = jnp.dot(h.astype(jnp.bfloat16), w3c_ref[...],
                     preferred_element_type=jnp.float32) + b3c_ref[...]
    lane = lax.broadcasted_iota(jnp.int32, logits.shape, 1)
    logits = jnp.where(lane < N_CLS, logits, -jnp.inf)      # mask padded softmax lanes
    m = jnp.max(logits, axis=-1, keepdims=True)
    e = jnp.exp(logits - m)
    denom = jnp.sum(e, axis=-1, keepdims=True)
    cls_out_ref[...] = e / denom                             # exact softmax division


# ---------------------------------------------------------------------------
# Parameter construction (deterministic; distributionally equivalent to torch
# nn.Linear default init), zero-padded to lane-dense widths, bf16 for the MXU.
# NOTE: torch stores weight as (out, in) and computes x @ W^T; porting a real
# checkpoint requires a transpose before padding.
# ---------------------------------------------------------------------------

def _init_linear(key, d_in, d_out):
    kw, kb = jax.random.split(key)
    bound = 1.0 / math.sqrt(d_in)
    w = jax.random.uniform(kw, (d_in, d_out), jnp.float32, -bound, bound)
    b = jax.random.uniform(kb, (d_out,), jnp.float32, -bound, bound)
    return w, b


def _pad_wb(w, b, pad_in, pad_out):
    d_in, d_out = w.shape
    wp = jnp.zeros((pad_in, pad_out), jnp.float32).at[:d_in, :d_out].set(w)
    bp = jnp.zeros((1, pad_out), jnp.float32).at[0, :d_out].set(b)
    return wp.astype(jnp.bfloat16), bp          # bf16 weights, f32 biases


# ---------------------------------------------------------------------------
# Tree bookkeeping (host-side, static / teacher-forced)
# ---------------------------------------------------------------------------

class Node:
    def __init__(self, node_class):
        self.node_class = node_class


def get_children(index):
    level = int(math.floor(math.log2(index + 1)))
    index_in_level = index - pow(2, level) + 1
    child_level = level + 1
    child_index_in_level = index_in_level * 2
    child_index = pow(2, child_level) - 1 + child_index_in_level
    return (child_index, child_index + 1)


def build_schedule(tree):
    """Pre-order DFS (same order as the PyTorch recursion).

    Visit position p holds its own input activation in ring slot p.  Children
    that don't exist get routed to the trash slot (index n_visits).
    Returns (visited node indices, class per visit, left slot, right slot).
    """
    visit_nodes, cls, lslot, rslot = [], [], [], []

    def rec(node_index):
        p = len(visit_nodes)
        visit_nodes.append(node_index)
        c = tree[node_index].node_class
        cls.append(c)
        lslot.append(-1)
        rslot.append(-1)
        lchild, rchild = get_children(node_index)
        if c == 0:
            lslot[p] = len(visit_nodes)
            rec(lchild)
            rslot[p] = len(visit_nodes)
            rec(rchild)
        elif c == 1:
            lslot[p] = len(visit_nodes)
            rec(lchild)
        # c == 2: leaf

    rec(0)
    n = len(visit_nodes)
    lslot = [s if s >= 0 else n for s in lslot]
    rslot = [s if s >= 0 else n for s in rslot]
    return visit_nodes, cls, lslot, rslot


# ---------------------------------------------------------------------------
# Decoder
# ---------------------------------------------------------------------------

class DecoderPallas:
    def __init__(self, key):
        kc1, kc2, kc3, ks0, ks1, ks2 = jax.random.split(key, 6)

        # node_classifier: 128 -> 37 -> 10 -> 3 (padded to 128 everywhere)
        s = CLS_SIZES
        w, b = _init_linear(kc1, s[0], s[1]); self.w1c, self.b1c = _pad_wb(w, b, D_IN, H_PAD)
        w, b = _init_linear(kc2, s[1], s[2]); self.w2c, self.b2c = _pad_wb(w, b, H_PAD, H_PAD)
        w, b = _init_linear(kc3, s[2], s[3]); self.w3c, self.b3c = _pad_wb(w, b, H_PAD, C_PAD)
        self.ac = jnp.full((2,), 0.25, jnp.float32)     # classifier PReLU alphas (SMEM)

        # element nets (split / similar / shape), padded to a common shape, stacked.
        w1e, b1e, w2e, b2e = [], [], [], []
        for c, kk in zip((0, 1, 2), (ks0, ks1, ks2)):
            k1, k2 = jax.random.split(kk)
            si = ELEM_SIZES[c]
            w1_, b1_ = _init_linear(k1, si[0], si[1])
            w2_, b2_ = _init_linear(k2, si[1], si[2])
            w1p, b1p = _pad_wb(w1_, b1_, D_IN, E_H_PAD)
            w2p, b2p = _pad_wb(w2_, b2_, E_H_PAD, E_O_PAD)
            w1e.append(w1p); b1e.append(b1p); w2e.append(w2p); b2e.append(b2p)
        self.w1e = jnp.stack(w1e)                       # (3, 128, 256) bf16
        self.b1e = jnp.stack(b1e)                       # (3,   1, 256) f32
        self.w2e = jnp.stack(w2e)                       # (3, 256, 256) bf16
        self.b2e = jnp.stack(b2e)                       # (3,   1, 256) f32
        self.ae = jnp.full((3,), 0.25, jnp.float32)     # element PReLU alphas (SMEM)

        self._fwd = jax.jit(self._fused_forward)

    # Single fused kernel (no grid): in-kernel traversal + deferred batched classifier.
    def _fused_forward(self, x_pad, cls_arr, lslot_arr, rslot_arr):
        n = cls_arr.shape[0]
        bp = x_pad.shape[0]

        smem = pl.BlockSpec(memory_space=pltpu.MemorySpace.SMEM)
        vmem = pl.BlockSpec(memory_space=pltpu.MemorySpace.VMEM)

        return pl.pallas_call(
            _decoder_tree_kernel,
            out_shape=(
                jax.ShapeDtypeStruct((n * bp, C_PAD), jnp.float32),     # classifier softmax
                jax.ShapeDtypeStruct((n, bp, E_O_PAD), jnp.float32),    # element outputs
            ),
            in_specs=[
                smem, smem, smem,        # cls, lslot, rslot schedules
                vmem,                    # x
                vmem, vmem, vmem, vmem, vmem, vmem,   # classifier w1/b1/w2/b2/w3/b3
                smem,                    # classifier PReLU alphas
                vmem, vmem, vmem, vmem,  # stacked element w1/b1/w2/b2
                smem,                    # element PReLU alphas
            ],
            out_specs=(vmem, vmem),
            scratch_shapes=[
                # Activation ring: n real slots + 1 trash slot, lane-dense f32.
                # (bf16 / depth-sized ring only matters for very deep trees on v7x.)
                pltpu.VMEM(((n + 1) * bp, D_IN), jnp.float32),
            ],
        )(cls_arr, lslot_arr, rslot_arr, x_pad,
          self.w1c, self.b1c, self.w2c, self.b2c, self.w3c, self.b3c, self.ac,
          self.w1e, self.b1e, self.w2e, self.b2e, self.ae)

    # Decoder.forward (teacher forcing: tree labels drive the recursion)
    def forward(self, x, tree):
        visit_nodes, cls_l, lslot_l, rslot_l = build_schedule(tree)
        n = len(visit_nodes)
        b = x.shape[0]
        bp = max(8, ((b + 7) // 8) * 8)                 # pad batch to a full sublane tile
        x_pad = jnp.zeros((bp, D_IN), jnp.float32).at[:b, :].set(x.astype(jnp.float32))

        cls_out, elem_out = self._fwd(
            x_pad,
            jnp.asarray(cls_l, jnp.int32),
            jnp.asarray(lslot_l, jnp.int32),
            jnp.asarray(rslot_l, jnp.int32),
        )
        cls_out = cls_out.reshape(n, bp, C_PAD)

        classes_pred = [(visit_nodes[p], cls_out[p, :b, :N_CLS]) for p in range(n)]
        sims_pred = [(visit_nodes[p], elem_out[p, :b, 128:136])
                     for p in range(n) if cls_l[p] == 1]
        shapes_pred = [(visit_nodes[p], elem_out[p, :b, 0:8])
                       for p in range(n) if cls_l[p] == 2]
        return classes_pred, sims_pred, shapes_pred


# ---------------------------------------------------------------------------
# Main
# ---------------------------------------------------------------------------

if __name__ == "__main__":
    key = jax.random.PRNGKey(0)
    k_param, k_x = jax.random.split(key)

    decoder = DecoderPallas(k_param)

    B = 2
    x = jax.random.normal(k_x, (B, 128), jnp.float32)

    # Synthetic teacher-forcing labels:
    #   node 0: split (0) -> children 1, 2
    #   node 1: similar (1) -> child 3
    #   node 2: shape (2) -> leaf
    #   node 3: shape (2) -> leaf
    tree_classes = [0, 1, 2, 2, 2, 2, 2]
    tree = [Node(c) for c in tree_classes]

    classes_pred, sims_pred, shapes_pred = decoder.forward(x, tree)

    for _, arr in classes_pred + sims_pred + shapes_pred:
        jax.block_until_ready(arr)

    # Shape / sanity checks (4 visited nodes, pre-order: 0, 1, 3, 2).
    assert len(classes_pred) == 4
    assert all(a.shape == (B, 3) for _, a in classes_pred)
    assert len(sims_pred) == 1 and all(a.shape == (B, 8) for _, a in sims_pred)
    assert len(shapes_pred) == 2 and all(a.shape == (B, 8) for _, a in shapes_pred)
    s0 = float(jnp.sum(classes_pred[0][1][0]))
    assert abs(s0 - 1.0) < 1e-5, s0   # exact softmax: rows sum to 1
    assert all(bool(jnp.all(jnp.isfinite(a))) for _, a in classes_pred)

    print("KERNEL_OK")
</pallas_src>

<mosaic_0001>
module attributes {stable_mosaic.version = 11 : i64} {
  func.func @_decoder_tree_kernel(%arg0: memref<4xi32, #tpu.memory_space<smem>>, %arg1: memref<4xi32, #tpu.memory_space<smem>>, %arg2: memref<4xi32, #tpu.memory_space<smem>>, %arg3: memref<8x128xf32, #tpu.memory_space<vmem>>, %arg4: memref<128x128xbf16, #tpu.memory_space<vmem>>, %arg5: memref<1x128xf32, #tpu.memory_space<vmem>>, %arg6: memref<128x128xbf16, #tpu.memory_space<vmem>>, %arg7: memref<1x128xf32, #tpu.memory_space<vmem>>, %arg8: memref<128x128xbf16, #tpu.memory_space<vmem>>, %arg9: memref<1x128xf32, #tpu.memory_space<vmem>>, %arg10: memref<2xf32, #tpu.memory_space<smem>>, %arg11: memref<3x128x256xbf16, #tpu.memory_space<vmem>>, %arg12: memref<3x1x256xf32, #tpu.memory_space<vmem>>, %arg13: memref<3x256x256xbf16, #tpu.memory_space<vmem>>, %arg14: memref<3x1x256xf32, #tpu.memory_space<vmem>>, %arg15: memref<3xf32, #tpu.memory_space<smem>>, %arg16: memref<32x128xf32, #tpu.memory_space<vmem>>, %arg17: memref<4x8x256xf32, #tpu.memory_space<vmem>>, %arg18: memref<40x128xf32, #tpu.memory_space<vmem>>) attributes {dimension_semantics = [], scalar_prefetch = 0 : i64, scratch_operands = 1 : i64, tpu.core_type = #tpu.core_type<tc>} {
    %c0 = arith.constant 0 : index
    %c0_0 = arith.constant 0 : index
    %0 = vector.load %arg3[%c0, %c0_0] : memref<8x128xf32, #tpu.memory_space<vmem>>, vector<8x128xf32>
    %c0_1 = arith.constant 0 : index
    %c0_2 = arith.constant 0 : index
    %1 = vector.load %arg18[%c0_1, %c0_2] : memref<40x128xf32, #tpu.memory_space<vmem>>, vector<8x128xf32>
    tpu.vector_store %arg18[%c0_1, %c0_2], %0 {strides = array<i32>} : memref<40x128xf32, #tpu.memory_space<vmem>>, vector<8x128xf32>,
    %c0_3 = arith.constant 0 : index
    %2 = memref.load %arg0[%c0_3] : memref<4xi32, #tpu.memory_space<smem>>
    %c0_4 = arith.constant 0 : index
    %c0_5 = arith.constant 0 : index
    %3 = vector.load %arg18[%c0_4, %c0_5] : memref<40x128xf32, #tpu.memory_space<vmem>>, vector<8x128xf32>
    %4 = arith.truncf %3 : vector<8x128xf32> to vector<8x128xbf16>
    %5 = arith.index_cast %2 : i32 to index
    %c0_6 = arith.constant 0 : index
    %c0_7 = arith.constant 0 : index
    %6 = vector.load %arg11[%5, %c0_6, %c0_7] : memref<3x128x256xbf16, #tpu.memory_space<vmem>>, vector<1x128x256xbf16>
    %7 = vector.shape_cast %6 : vector<1x128x256xbf16> to vector<128x256xbf16>
    %cst = arith.constant dense<0.000000e+00> : vector<8x256xf32>
    %8 = tpu.matmul %4, %7, %cst {dimension_numbers = #tpu.dot_dimension_numbers<[1], [0], [0], [1], [0, 0, 1, 1], [], []>} : vector<8x128xbf16>, vector<128x256xbf16>, vector<8x256xf32> -> vector<8x256xf32>
    %9 = arith.index_cast %2 : i32 to index
    %c0_8 = arith.constant 0 : index
    %c0_9 = arith.constant 0 : index
    %10 = vector.load %arg12[%9, %c0_8, %c0_9] : memref<3x1x256xf32, #tpu.memory_space<vmem>>, vector<1x1x256xf32>
    %11 = vector.shape_cast %10 : vector<1x1x256xf32> to vector<1x256xf32>
    %12 = vector.broadcast %11 : vector<1x256xf32> to vector<8x256xf32>
    %13 = arith.addf %8, %12 : vector<8x256xf32>
    %14 = arith.index_cast %2 : i32 to index
    %15 = memref.load %arg15[%14] : memref<3xf32, #tpu.memory_space<smem>>
    %cst_10 = arith.constant 0.000000e+00 : f32
    %16 = vector.broadcast %cst_10 : f32 to vector<8x256xf32>
    %17 = arith.cmpf ogt, %13, %16 : vector<8x256xf32>
    %18 = vector.broadcast %15 : f32 to vector<8x256xf32>
    %19 = arith.mulf %18, %13 : vector<8x256xf32>
    %20 = arith.select %17, %13, %19 : vector<8x256xi1>, vector<8x256xf32>
    %21 = arith.truncf %20 : vector<8x256xf32> to vector<8x256xbf16>
    %22 = arith.index_cast %2 : i32 to index
    %c0_11 = arith.constant 0 : index
    %c0_12 = arith.constant 0 : index
    %23 = vector.load %arg13[%22, %c0_11, %c0_12] : memref<3x256x256xbf16, #tpu.memory_space<vmem>>, vector<1x256x256xbf16>
    %24 = vector.shape_cast %23 : vector<1x256x256xbf16> to vector<256x256xbf16>
    %cst_13 = arith.constant dense<0.000000e+00> : vector<8x256xf32>
    %25 = tpu.matmul %21, %24, %cst_13 {dimension_numbers = #tpu.dot_dimension_numbers<[1], [0], [0], [1], [0, 0, 1, 1], [], []>} : vector<8x256xbf16>, vector<256x256xbf16>, vector<8x256xf32> -> vector<8x256xf32>
    %26 = arith.index_cast %2 : i32 to index
    %c0_14 = arith.constant 0 : index
    %c0_15 = arith.constant 0 : index
    %27 = vector.load %arg14[%26, %c0_14, %c0_15] : memref<3x1x256xf32, #tpu.memory_space<vmem>>, vector<1x1x256xf32>
    %28 = vector.shape_cast %27 : vector<1x1x256xf32> to vector<1x256xf32>
    %29 = vector.broadcast %28 : vector<1x256xf32> to vector<8x256xf32>
    %30 = arith.addf %25, %29 : vector<8x256xf32>
    %c0_16 = arith.constant 0 : index
    %c0_17 = arith.constant 0 : index
    %c0_18 = arith.constant 0 : index
    %31 = vector.load %arg17[%c0_16, %c0_17, %c0_18] : memref<4x8x256xf32, #tpu.memory_space<vmem>>, vector<1x8x256xf32>
    %32 = vector.shape_cast %31 : vector<1x8x256xf32> to vector<8x256xf32>
    %33 = vector.shape_cast %30 : vector<8x256xf32> to vector<1x8x256xf32>
    tpu.vector_store %arg17[%c0_16, %c0_17, %c0_18], %33 {strides = array<i32>} : memref<4x8x256xf32, #tpu.memory_space<vmem>>, vector<1x8x256xf32>,
    %34 = vector.extract_strided_slice %30 {offsets = [0, 0], sizes = [8, 128], strides = [1, 1]} : vector<8x256xf32> to vector<8x128xf32>
    %c0_19 = arith.constant 0 : index
    %35 = memref.load %arg1[%c0_19] : memref<4xi32, #tpu.memory_space<smem>>
    %c8_i32 = arith.constant 8 : i32
    %36 = arith.muli %35, %c8_i32 : i32
    %37 = tpu.assume_multiple %36, 8 : i32
    %38 = arith.index_cast %37 : i32 to index
    %c0_20 = arith.constant 0 : index
    %39 = vector.load %arg18[%38, %c0_20] : memref<40x128xf32, #tpu.memory_space<vmem>>, vector<8x128xf32>
    tpu.vector_store %arg18[%38, %c0_20], %34 {strides = array<i32>} : memref<40x128xf32, #tpu.memory_space<vmem>>, vector<8x128xf32>,
    %40 = vector.extract_strided_slice %30 {offsets = [0, 128], sizes = [8, 128], strides = [1, 1]} : vector<8x256xf32> to vector<8x128xf32>
    %c0_21 = arith.constant 0 : index
    %41 = memref.load %arg2[%c0_21] : memref<4xi32, #tpu.memory_space<smem>>
    %c8_i32_22 = arith.constant 8 : i32
    %42 = arith.muli %41, %c8_i32_22 : i32
    %43 = tpu.assume_multiple %42, 8 : i32
    %44 = arith.index_cast %43 : i32 to index
    %c0_23 = arith.constant 0 : index
    %45 = vector.load %arg18[%44, %c0_23] : memref<40x128xf32, #tpu.memory_space<vmem>>, vector<8x128xf32>
    tpu.vector_store %arg18[%44, %c0_23], %40 {strides = array<i32>} : memref<40x128xf32, #tpu.memory_space<vmem>>, vector<8x128xf32>,
    %c1 = arith.constant 1 : index
    %46 = memref.load %arg0[%c1] : memref<4xi32, #tpu.memory_space<smem>>
    %c8 = arith.constant 8 : index
    %c0_24 = arith.constant 0 : index
    %47 = vector.load %arg18[%c8, %c0_24] : memref<40x128xf32, #tpu.memory_space<vmem>>, vector<8x128xf32>
    %48 = arith.truncf %47 : vector<8x128xf32> to vector<8x128xbf16>
    %49 = arith.index_cast %46 : i32 to index
    %c0_25 = arith.constant 0 : index
    %c0_26 = arith.constant 0 : index
    %50 = vector.load %arg11[%49, %c0_25, %c0_26] : memref<3x128x256xbf16, #tpu.memory_space<vmem>>, vector<1x128x256xbf16>
    %51 = vector.shape_cast %50 : vector<1x128x256xbf16> to vector<128x256xbf16>
    %cst_27 = arith.constant dense<0.000000e+00> : vector<8x256xf32>
    %52 = tpu.matmul %48, %51, %cst_27 {dimension_numbers = #tpu.dot_dimension_numbers<[1], [0], [0], [1], [0, 0, 1, 1], [], []>} : vector<8x128xbf16>, vector<128x256xbf16>, vector<8x256xf32> -> vector<8x256xf32>
    %53 = arith.index_cast %46 : i32 to index
    %c0_28 = arith.constant 0 : index
    %c0_29 = arith.constant 0 : index
    %54 = vector.load %arg12[%53, %c0_28, %c0_29] : memref<3x1x256xf32, #tpu.memory_space<vmem>>, vector<1x1x256xf32>
    %55 = vector.shape_cast %54 : vector<1x1x256xf32> to vector<1x256xf32>
    %56 = vector.broadcast %55 : vector<1x256xf32> to vector<8x256xf32>
    %57 = arith.addf %52, %56 : vector<8x256xf32>
    %58 = arith.index_cast %46 : i32 to index
    %59 = memref.load %arg15[%58] : memref<3xf32, #tpu.memory_space<smem>>
    %cst_30 = arith.constant 0.000000e+00 : f32
    %60 = vector.broadcast %cst_30 : f32 to vector<8x256xf32>
    %61 = arith.cmpf ogt, %57, %60 : vector<8x256xf32>
    %62 = vector.broadcast %59 : f32 to vector<8x256xf32>
    %63 = arith.mulf %62, %57 : vector<8x256xf32>
    %64 = arith.select %61, %57, %63 : vector<8x256xi1>, vector<8x256xf32>
    %65 = arith.truncf %64 : vector<8x256xf32> to vector<8x256xbf16>
    %66 = arith.index_cast %46 : i32 to index
    %c0_31 = arith.constant 0 : index
    %c0_32 = arith.constant 0 : index
    %67 = vector.load %arg13[%66, %c0_31, %c0_32] : memref<3x256x256xbf16, #tpu.memory_space<vmem>>, vector<1x256x256xbf16>
    %68 = vector.shape_cast %67 : vector<1x256x256xbf16> to vector<256x256xbf16>
    %cst_33 = arith.constant dense<0.000000e+00> : vector<8x256xf32>
    %69 = tpu.matmul %65, %68, %cst_33 {dimension_numbers = #tpu.dot_dimension_numbers<[1], [0], [0], [1], [0, 0, 1, 1], [], []>} : vector<8x256xbf16>, vector<256x256xbf16>, vector<8x256xf32> -> vector<8x256xf32>
    %70 = arith.index_cast %46 : i32 to index
    %c0_34 = arith.constant 0 : index
    %c0_35 = arith.constant 0 : index
    %71 = vector.load %arg14[%70, %c0_34, %c0_35] : memref<3x1x256xf32, #tpu.memory_space<vmem>>, vector<1x1x256xf32>
    %72 = vector.shape_cast %71 : vector<1x1x256xf32> to vector<1x256xf32>
    %73 = vector.broadcast %72 : vector<1x256xf32> to vector<8x256xf32>
    %74 = arith.addf %69, %73 : vector<8x256xf32>
    %c1_36 = arith.constant 1 : index
    %c0_37 = arith.constant 0 : index
    %c0_38 = arith.constant 0 : index
    %75 = vector.load %arg17[%c1_36, %c0_37, %c0_38] : memref<4x8x256xf32, #tpu.memory_space<vmem>>, vector<1x8x256xf32>
    %76 = vector.shape_cast %75 : vector<1x8x256xf32> to vector<8x256xf32>
    %77 = vector.shape_cast %74 : vector<8x256xf32> to vector<1x8x256xf32>
    tpu.vector_store %arg17[%c1_36, %c0_37, %c0_38], %77 {strides = array<i32>} : memref<4x8x256xf32, #tpu.memory_space<vmem>>, vector<1x8x256xf32>,
    %78 = vector.extract_strided_slice %74 {offsets = [0, 0], sizes = [8, 128], strides = [1, 1]} : vector<8x256xf32> to vector<8x128xf32>
    %c1_39 = arith.constant 1 : index
    %79 = memref.load %arg1[%c1_39] : memref<4xi32, #tpu.memory_space<smem>>
    %c8_i32_40 = arith.constant 8 : i32
    %80 = arith.muli %79, %c8_i32_40 : i32
    %81 = tpu.assume_multiple %80, 8 : i32
    %82 = arith.index_cast %81 : i32 to index
    %c0_41 = arith.constant 0 : index
    %83 = vector.load %arg18[%82, %c0_41] : memref<40x128xf32, #tpu.memory_space<vmem>>, vector<8x128xf32>
    tpu.vector_store %arg18[%82, %c0_41], %78 {strides = array<i32>} : memref<40x128xf32, #tpu.memory_space<vmem>>, vector<8x128xf32>,
    %84 = vector.extract_strided_slice %74 {offsets = [0, 128], sizes = [8, 128], strides = [1, 1]} : vector<8x256xf32> to vector<8x128xf32>
    %c1_42 = arith.constant 1 : index
    %85 = memref.load %arg2[%c1_42] : memref<4xi32, #tpu.memory_space<smem>>
    %c8_i32_43 = arith.constant 8 : i32
    %86 = arith.muli %85, %c8_i32_43 : i32
    %87 = tpu.assume_multiple %86, 8 : i32
    %88 = arith.index_cast %87 : i32 to index
    %c0_44 = arith.constant 0 : index
    %89 = vector.load %arg18[%88, %c0_44] : memref<40x128xf32, #tpu.memory_space<vmem>>, vector<8x128xf32>
    tpu.vector_store %arg18[%88, %c0_44], %84 {strides = array<i32>} : memref<40x128xf32, #tpu.memory_space<vmem>>, vector<8x128xf32>,
    %c2 = arith.constant 2 : index
    %90 = memref.load %arg0[%c2] : memref<4xi32, #tpu.memory_space<smem>>
    %c16 = arith.constant 16 : index
    %c0_45 = arith.constant 0 : index
    %91 = vector.load %arg18[%c16, %c0_45] : memref<40x128xf32, #tpu.memory_space<vmem>>, vector<8x128xf32>
    %92 = arith.truncf %91 : vector<8x128xf32> to vector<8x128xbf16>
    %93 = arith.index_cast %90 : i32 to index
    %c0_46 = arith.constant 0 : index
    %c0_47 = arith.constant 0 : index
    %94 = vector.load %arg11[%93, %c0_46, %c0_47] : memref<3x128x256xbf16, #tpu.memory_space<vmem>>, vector<1x128x256xbf16>
    %95 = vector.shape_cast %94 : vector<1x128x256xbf16> to vector<128x256xbf16>
    %cst_48 = arith.constant dense<0.000000e+00> : vector<8x256xf32>
    %96 = tpu.matmul %92, %95, %cst_48 {dimension_numbers = #tpu.dot_dimension_numbers<[1], [0], [0], [1], [0, 0, 1, 1], [], []>} : vector<8x128xbf16>, vector<128x256xbf16>, vector<8x256xf32> -> vector<8x256xf32>
    %97 = arith.index_cast %90 : i32 to index
    %c0_49 = arith.constant 0 : index
    %c0_50 = arith.constant 0 : index
    %98 = vector.load %arg12[%97, %c0_49, %c0_50] : memref<3x1x256xf32, #tpu.memory_space<vmem>>, vector<1x1x256xf32>
    %99 = vector.shape_cast %98 : vector<1x1x256xf32> to vector<1x256xf32>
    %100 = vector.broadcast %99 : vector<1x256xf32> to vector<8x256xf32>
    %101 = arith.addf %96, %100 : vector<8x256xf32>
    %102 = arith.index_cast %90 : i32 to index
    %103 = memref.load %arg15[%102] : memref<3xf32, #tpu.memory_space<smem>>
    %cst_51 = arith.constant 0.000000e+00 : f32
    %104 = vector.broadcast %cst_51 : f32 to vector<8x256xf32>
    %105 = arith.cmpf ogt, %101, %104 : vector<8x256xf32>
    %106 = vector.broadcast %103 : f32 to vector<8x256xf32>
    %107 = arith.mulf %106, %101 : vector<8x256xf32>
    %108 = arith.select %105, %101, %107 : vector<8x256xi1>, vector<8x256xf32>
    %109 = arith.truncf %108 : vector<8x256xf32> to vector<8x256xbf16>
    %110 = arith.index_cast %90 : i32 to index
    %c0_52 = arith.constant 0 : index
    %c0_53 = arith.constant 0 : index
    %111 = vector.load %arg13[%110, %c0_52, %c0_53] : memref<3x256x256xbf16, #tpu.memory_space<vmem>>, vector<1x256x256xbf16>
    %112 = vector.shape_cast %111 : vector<1x256x256xbf16> to vector<256x256xbf16>
    %cst_54 = arith.constant dense<0.000000e+00> : vector<8x256xf32>
    %113 = tpu.matmul %109, %112, %cst_54 {dimension_numbers = #tpu.dot_dimension_numbers<[1], [0], [0], [1], [0, 0, 1, 1], [], []>} : vector<8x256xbf16>, vector<256x256xbf16>, vector<8x256xf32> -> vector<8x256xf32>
    %114 = arith.index_cast %90 : i32 to index
    %c0_55 = arith.constant 0 : index
    %c0_56 = arith.constant 0 : index
    %115 = vector.load %arg14[%114, %c0_55, %c0_56] : memref<3x1x256xf32, #tpu.memory_space<vmem>>, vector<1x1x256xf32>
    %116 = vector.shape_cast %115 : vector<1x1x256xf32> to vector<1x256xf32>
    %117 = vector.broadcast %116 : vector<1x256xf32> to vector<8x256xf32>
    %118 = arith.addf %113, %117 : vector<8x256xf32>
    %c2_57 = arith.constant 2 : index
    %c0_58 = arith.constant 0 : index
    %c0_59 = arith.constant 0 : index
    %119 = vector.load %arg17[%c2_57, %c0_58, %c0_59] : memref<4x8x256xf32, #tpu.memory_space<vmem>>, vector<1x8x256xf32>
    %120 = vector.shape_cast %119 : vector<1x8x256xf32> to vector<8x256xf32>
    %121 = vector.shape_cast %118 : vector<8x256xf32> to vector<1x8x256xf32>
    tpu.vector_store %arg17[%c2_57, %c0_58, %c0_59], %121 {strides = array<i32>} : memref<4x8x256xf32, #tpu.memory_space<vmem>>, vector<1x8x256xf32>,
    %122 = vector.extract_strided_slice %118 {offsets = [0, 0], sizes = [8, 128], strides = [1, 1]} : vector<8x256xf32> to vector<8x128xf32>
    %c2_60 = arith.constant 2 : index
    %123 = memref.load %arg1[%c2_60] : memref<4xi32, #tpu.memory_space<smem>>
    %c8_i32_61 = arith.constant 8 : i32
    %124 = arith.muli %123, %c8_i32_61 : i32
    %125 = tpu.assume_multiple %124, 8 : i32
    %126 = arith.index_cast %125 : i32 to index
    %c0_62 = arith.constant 0 : index
    %127 = vector.load %arg18[%126, %c0_62] : memref<40x128xf32, #tpu.memory_space<vmem>>, vector<8x128xf32>
    tpu.vector_store %arg18[%126, %c0_62], %122 {strides = array<i32>} : memref<40x128xf32, #tpu.memory_space<vmem>>, vector<8x128xf32>,
    %128 = vector.extract_strided_slice %118 {offsets = [0, 128], sizes = [8, 128], strides = [1, 1]} : vector<8x256xf32> to vector<8x128xf32>
    %c2_63 = arith.constant 2 : index
    %129 = memref.load %arg2[%c2_63] : memref<4xi32, #tpu.memory_space<smem>>
    %c8_i32_64 = arith.constant 8 : i32
    %130 = arith.muli %129, %c8_i32_64 : i32
    %131 = tpu.assume_multiple %130, 8 : i32
    %132 = arith.index_cast %131 : i32 to index
    %c0_65 = arith.constant 0 : index
    %133 = vector.load %arg18[%132, %c0_65] : memref<40x128xf32, #tpu.memory_space<vmem>>, vector<8x128xf32>
    tpu.vector_store %arg18[%132, %c0_65], %128 {strides = array<i32>} : memref<40x128xf32, #tpu.memory_space<vmem>>, vector<8x128xf32>,
    %c3 = arith.constant 3 : index
    %134 = memref.load %arg0[%c3] : memref<4xi32, #tpu.memory_space<smem>>
    %c24 = arith.constant 24 : index
    %c0_66 = arith.constant 0 : index
    %135 = vector.load %arg18[%c24, %c0_66] : memref<40x128xf32, #tpu.memory_space<vmem>>, vector<8x128xf32>
    %136 = arith.truncf %135 : vector<8x128xf32> to vector<8x128xbf16>
    %137 = arith.index_cast %134 : i32 to index
    %c0_67 = arith.constant 0 : index
    %c0_68 = arith.constant 0 : index
    %138 = vector.load %arg11[%137, %c0_67, %c0_68] : memref<3x128x256xbf16, #tpu.memory_space<vmem>>, vector<1x128x256xbf16>
    %139 = vector.shape_cast %138 : vector<1x128x256xbf16> to vector<128x256xbf16>
    %cst_69 = arith.constant dense<0.000000e+00> : vector<8x256xf32>
    %140 = tpu.matmul %136, %139, %cst_69 {dimension_numbers = #tpu.dot_dimension_numbers<[1], [0], [0], [1], [0, 0, 1, 1], [], []>} : vector<8x128xbf16>, vector<128x256xbf16>, vector<8x256xf32> -> vector<8x256xf32>
    %141 = arith.index_cast %134 : i32 to index
    %c0_70 = arith.constant 0 : index
    %c0_71 = arith.constant 0 : index
    %142 = vector.load %arg12[%141, %c0_70, %c0_71] : memref<3x1x256xf32, #tpu.memory_space<vmem>>, vector<1x1x256xf32>
    %143 = vector.shape_cast %142 : vector<1x1x256xf32> to vector<1x256xf32>
    %144 = vector.broadcast %143 : vector<1x256xf32> to vector<8x256xf32>
    %145 = arith.addf %140, %144 : vector<8x256xf32>
    %146 = arith.index_cast %134 : i32 to index
    %147 = memref.load %arg15[%146] : memref<3xf32, #tpu.memory_space<smem>>
    %cst_72 = arith.constant 0.000000e+00 : f32
    %148 = vector.broadcast %cst_72 : f32 to vector<8x256xf32>
    %149 = arith.cmpf ogt, %145, %148 : vector<8x256xf32>
    %150 = vector.broadcast %147 : f32 to vector<8x256xf32>
    %151 = arith.mulf %150, %145 : vector<8x256xf32>
    %152 = arith.select %149, %145, %151 : vector<8x256xi1>, vector<8x256xf32>
    %153 = arith.truncf %152 : vector<8x256xf32> to vector<8x256xbf16>
    %154 = arith.index_cast %134 : i32 to index
    %c0_73 = arith.constant 0 : index
    %c0_74 = arith.constant 0 : index
    %155 = vector.load %arg13[%154, %c0_73, %c0_74] : memref<3x256x256xbf16, #tpu.memory_space<vmem>>, vector<1x256x256xbf16>
    %156 = vector.shape_cast %155 : vector<1x256x256xbf16> to vector<256x256xbf16>
    %cst_75 = arith.constant dense<0.000000e+00> : vector<8x256xf32>
    %157 = tpu.matmul %153, %156, %cst_75 {dimension_numbers = #tpu.dot_dimension_numbers<[1], [0], [0], [1], [0, 0, 1, 1], [], []>} : vector<8x256xbf16>, vector<256x256xbf16>, vector<8x256xf32> -> vector<8x256xf32>
    %158 = arith.index_cast %134 : i32 to index
    %c0_76 = arith.constant 0 : index
    %c0_77 = arith.constant 0 : index
    %159 = vector.load %arg14[%158, %c0_76, %c0_77] : memref<3x1x256xf32, #tpu.memory_space<vmem>>, vector<1x1x256xf32>
    %160 = vector.shape_cast %159 : vector<1x1x256xf32> to vector<1x256xf32>
    %161 = vector.broadcast %160 : vector<1x256xf32> to vector<8x256xf32>
    %162 = arith.addf %157, %161 : vector<8x256xf32>
    %c3_78 = arith.constant 3 : index
    %c0_79 = arith.constant 0 : index
    %c0_80 = arith.constant 0 : index
    %163 = vector.load %arg17[%c3_78, %c0_79, %c0_80] : memref<4x8x256xf32, #tpu.memory_space<vmem>>, vector<1x8x256xf32>
    %164 = vector.shape_cast %163 : vector<1x8x256xf32> to vector<8x256xf32>
    %165 = vector.shape_cast %162 : vector<8x256xf32> to vector<1x8x256xf32>
    tpu.vector_store %arg17[%c3_78, %c0_79, %c0_80], %165 {strides = array<i32>} : memref<4x8x256xf32, #tpu.memory_space<vmem>>, vector<1x8x256xf32>,
    %166 = vector.extract_strided_slice %162 {offsets = [0, 0], sizes = [8, 128], strides = [1, 1]} : vector<8x256xf32> to vector<8x128xf32>
    %c3_81 = arith.constant 3 : index
    %167 = memref.load %arg1[%c3_81] : memref<4xi32, #tpu.memory_space<smem>>
    %c8_i32_82 = arith.constant 8 : i32
    %168 = arith.muli %167, %c8_i32_82 : i32
    %169 = tpu.assume_multiple %168, 8 : i32
    %170 = arith.index_cast %169 : i32 to index
    %c0_83 = arith.constant 0 : index
    %171 = vector.load %arg18[%170, %c0_83] : memref<40x128xf32, #tpu.memory_space<vmem>>, vector<8x128xf32>
    tpu.vector_store %arg18[%170, %c0_83], %166 {strides = array<i32>} : memref<40x128xf32, #tpu.memory_space<vmem>>, vector<8x128xf32>,
    %172 = vector.extract_strided_slice %162 {offsets = [0, 128], sizes = [8, 128], strides = [1, 1]} : vector<8x256xf32> to vector<8x128xf32>
    %c3_84 = arith.constant 3 : index
    %173 = memref.load %arg2[%c3_84] : memref<4xi32, #tpu.memory_space<smem>>
    %c8_i32_85 = arith.constant 8 : i32
    %174 = arith.muli %173, %c8_i32_85 : i32
    %175 = tpu.assume_multiple %174, 8 : i32
    %176 = arith.index_cast %175 : i32 to index
    %c0_86 = arith.constant 0 : index
    %177 = vector.load %arg18[%176, %c0_86] : memref<40x128xf32, #tpu.memory_space<vmem>>, vector<8x128xf32>
    tpu.vector_store %arg18[%176, %c0_86], %172 {strides = array<i32>} : memref<40x128xf32, #tpu.memory_space<vmem>>, vector<8x128xf32>,
    %c0_87 = arith.constant 0 : index
    %c0_88 = arith.constant 0 : index
    %178 = vector.load %arg18[%c0_87, %c0_88] : memref<40x128xf32, #tpu.memory_space<vmem>>, vector<32x128xf32>
    %179 = arith.truncf %178 : vector<32x128xf32> to vector<32x128xbf16>
    %c0_89 = arith.constant 0 : index
    %c0_90 = arith.constant 0 : index
    %180 = vector.load %arg4[%c0_89, %c0_90] : memref<128x128xbf16, #tpu.memory_space<vmem>>, vector<128x128xbf16>
    %cst_91 = arith.constant dense<0.000000e+00> : vector<32x128xf32>
    %181 = tpu.matmul %179, %180, %cst_91 {dimension_numbers = #tpu.dot_dimension_numbers<[1], [0], [0], [1], [0, 0, 1, 1], [], []>} : vector<32x128xbf16>, vector<128x128xbf16>, vector<32x128xf32> -> vector<32x128xf32>
    %c0_92 = arith.constant 0 : index
    %c0_93 = arith.constant 0 : index
    %182 = vector.load %arg5[%c0_92, %c0_93] : memref<1x128xf32, #tpu.memory_space<vmem>>, vector<1x128xf32>
    %183 = vector.broadcast %182 : vector<1x128xf32> to vector<32x128xf32>
    %184 = arith.addf %181, %183 : vector<32x128xf32>
    %c0_94 = arith.constant 0 : index
    %185 = memref.load %arg10[%c0_94] : memref<2xf32, #tpu.memory_space<smem>>
    %cst_95 = arith.constant 0.000000e+00 : f32
    %186 = vector.broadcast %cst_95 : f32 to vector<32x128xf32>
    %187 = arith.cmpf ogt, %184, %186 : vector<32x128xf32>
    %188 = vector.broadcast %185 : f32 to vector<32x128xf32>
    %189 = arith.mulf %188, %184 : vector<32x128xf32>
    %190 = arith.select %187, %184, %189 : vector<32x128xi1>, vector<32x128xf32>
    %191 = arith.truncf %190 : vector<32x128xf32> to vector<32x128xbf16>
    %c0_96 = arith.constant 0 : index
    %c0_97 = arith.constant 0 : index
    %192 = vector.load %arg6[%c0_96, %c0_97] : memref<128x128xbf16, #tpu.memory_space<vmem>>, vector<128x128xbf16>
    %cst_98 = arith.constant dense<0.000000e+00> : vector<32x128xf32>
    %193 = tpu.matmul %191, %192, %cst_98 {dimension_numbers = #tpu.dot_dimension_numbers<[1], [0], [0], [1], [0, 0, 1, 1], [], []>} : vector<32x128xbf16>, vector<128x128xbf16>, vector<32x128xf32> -> vector<32x128xf32>
    %c0_99 = arith.constant 0 : index
    %c0_100 = arith.constant 0 : index
    %194 = vector.load %arg7[%c0_99, %c0_100] : memref<1x128xf32, #tpu.memory_space<vmem>>, vector<1x128xf32>
    %195 = vector.broadcast %194 : vector<1x128xf32> to vector<32x128xf32>
    %196 = arith.addf %193, %195 : vector<32x128xf32>
    %c1_101 = arith.constant 1 : index
    %197 = memref.load %arg10[%c1_101] : memref<2xf32, #tpu.memory_space<smem>>
    %cst_102 = arith.constant 0.000000e+00 : f32
    %198 = vector.broadcast %cst_102 : f32 to vector<32x128xf32>
    %199 = arith.cmpf ogt, %196, %198 : vector<32x128xf32>
    %200 = vector.broadcast %197 : f32 to vector<32x128xf32>
    %201 = arith.mulf %200, %196 : vector<32x128xf32>
    %202 = arith.select %199, %196, %201 : vector<32x128xi1>, vector<32x128xf32>
    %203 = arith.truncf %202 : vector<32x128xf32> to vector<32x128xbf16>
    %c0_103 = arith.constant 0 : index
    %c0_104 = arith.constant 0 : index
    %204 = vector.load %arg8[%c0_103, %c0_104] : memref<128x128xbf16, #tpu.memory_space<vmem>>, vector<128x128xbf16>
    %cst_105 = arith.constant dense<0.000000e+00> : vector<32x128xf32>
    %205 = tpu.matmul %203, %204, %cst_105 {dimension_numbers = #tpu.dot_dimension_numbers<[1], [0], [0], [1], [0, 0, 1, 1], [], []>} : vector<32x128xbf16>, vector<128x128xbf16>, vector<32x128xf32> -> vector<32x128xf32>
    %c0_106 = arith.constant 0 : index
    %c0_107 = arith.constant 0 : index
    %206 = vector.load %arg9[%c0_106, %c0_107] : memref<1x128xf32, #tpu.memory_space<vmem>>, vector<1x128xf32>
    %207 = vector.broadcast %206 : vector<1x128xf32> to vector<32x128xf32>
    %208 = arith.addf %205, %207 : vector<32x128xf32>
    %209 = tpu.iota {dimensions = array<i32: 1>} : vector<32x128xi32>
    %c3_i32 = arith.constant 3 : i32
    %210 = vector.broadcast %c3_i32 : i32 to vector<32x128xi32>
    %211 = arith.cmpi slt, %209, %210 : vector<32x128xi32>
    %cst_108 = arith.constant 0xFF800000 : f32
    %212 = vector.broadcast %cst_108 : f32 to vector<32x128xf32>
    %213 = arith.select %211, %208, %212 : vector<32x128xi1>, vector<32x128xf32>
    %cst_109 = arith.constant dense<0xFF800000> : vector<32xf32>
    %214 = vector.multi_reduction <maximumf>, %213, %cst_109 [1] : vector<32x128xf32> to vector<32xf32>
    %215 = vector.shape_cast %214 : vector<32xf32> to vector<32x1xf32>
    %216 = vector.broadcast %215 : vector<32x1xf32> to vector<32x128xf32>
    %217 = arith.subf %213, %216 : vector<32x128xf32>
    %218 = math.exp %217 : vector<32x128xf32>
    %cst_110 = arith.constant dense<0.000000e+00> : vector<32xf32>
    %219 = vector.multi_reduction <add>, %218, %cst_110 [1] : vector<32x128xf32> to vector<32xf32>
    %220 = vector.shape_cast %219 : vector<32xf32> to vector<32x1xf32>
    %221 = vector.broadcast %220 : vector<32x1xf32> to vector<32x128xf32>
    %222 = arith.divf %218, %221 : vector<32x128xf32>
    %c0_111 = arith.constant 0 : index
    %c0_112 = arith.constant 0 : index
    %223 = vector.load %arg16[%c0_111, %c0_112] : memref<32x128xf32, #tpu.memory_space<vmem>>, vector<32x128xf32>
    tpu.vector_store %arg16[%c0_111, %c0_112], %222 {strides = array<i32>} : memref<32x128xf32, #tpu.memory_space<vmem>>, vector<32x128xf32>,
    return
  }
}

</mosaic_0001>

<bundles_post_ra>
// kernel: _fused_forward.1
= control target key start
LH: loop header
LB: loop body
LE: loop exit
PB: predicated region body
PF: predicated region fallthrough
CT: control target
= control target key end

     0   :  { %s3715_s0 = inlined_call_operand.vmem [shape: s32[4], index: 0, kind: input, shape index: {}]   ;;  %s3716_s1 = inlined_call_operand.vmem [shape: s32[4], index: 1, kind: input, shape index: {}]   ;;  %s3717_s2 = inlined_call_operand.vmem [shape: s32[4], index: 2, kind: input, shape index: {}]   ;;  %s3718_s3 = inlined_call_operand.vmem [shape: f32[8,128], index: 3, kind: input, shape index: {}]   ;;  %s3719_s4 = inlined_call_operand.vmem [shape: bf16[128,128], index: 4, kind: input, shape index: {}]   ;;  %s3720_s5 = inlined_call_operand.vmem [shape: f32[1,128], index: 5, kind: input, shape index: {}]   ;;  %s3721_s6 = inlined_call_operand.vmem [shape: bf16[128,128], index: 6, kind: input, shape index: {}]   ;;  %s3722_s7 = inlined_call_operand.vmem [shape: f32[1,128], index: 7, kind: input, shape index: {}]   ;;  %s3723_s8 = inlined_call_operand.vmem [shape: bf16[128,128], index: 8, kind: input, shape index: {}]   ;;  %s3724_s9 = inlined_call_operand.vmem [shape: f32[1,128], index: 9, kind: input, shape index: {}]   ;;  %s3725_s10 = inlined_call_operand.vmem [shape: f32[2], index: 10, kind: input, shape index: {}]   ;;  %s3726_s11 = inlined_call_operand.vmem [shape: bf16[3,128,256], index: 11, kind: input, shape index: {}]   ;;  %s3727_s12 = inlined_call_operand.vmem [shape: f32[3,1,256], index: 12, kind: input, shape index: {}]   ;;  %s3728_s13 = inlined_call_operand.vmem [shape: bf16[3,256,256], index: 13, kind: input, shape index: {}]   ;;  %s3729_s14 = inlined_call_operand.vmem [shape: f32[3,1,256], index: 14, kind: input, shape index: {}]   ;;  %s3730_s15 = inlined_call_operand.vmem [shape: f32[3], index: 15, kind: input, shape index: {}]   ;;  %s3731_s16 = inlined_call_operand.hbm [shape: f32[32,128], index: 16, kind: output, shape index: {0}]   ;;  %s3732_s17 = inlined_call_operand.hbm [shape: f32[4,8,256], index: 17, kind: output, shape index: {1}]  }
   0x1   :  { %3733 = sst [smem:[#allocation20_spill]] %s3715_s0 }
   0x2   :  { %3734 = sst [smem:[#allocation21_spill]] %s3716_s1 }
   0x3   :  { %23 = vsyncpa [#allocation5], 0 }
   0x4   :  { %24 = vsyncpa [#allocation7], 0 }
   0x5   :  { %25 = vsyncpa [#allocation10], 0 }
   0x6   :  { %26 = vsyncpa [#allocation4], 0  ;;  %s3735_s26 = sld [smem:[#allocation21_spill]] }
   0xc   :  { %s44_s27 = sshll.u32 %s3735_s26, 4  ;;  %s45_s27 = int_to_ptr.vmem [resolvable:$true] %s44_s27 }
   0xd   :  { %27 = vsyncpa [#allocation14], 0  ;;  %s78_s0 = sshll.u32 %s3725_s10, 4  ;;  %s3049_s30 = scalar_lea.vmem %s45_s27, 16  ;;  %s79_s0 = int_to_ptr.vmem [resolvable:$true] %s78_s0 }
   0xe   :  { %p3050_p0 = scmp.ne.s32.totalorder %s45_s27, %s3049_s30  ;;  %p3054_p1 = scmp.lt.s32.totalorder %s45_s27, %s45_s27 }
   0xf   :  { %p3055_p2 = scmp.lt.s32.totalorder %s3049_s30, %s3049_s30 }
  0x11   :  { %p3056_p3 = por %p3055_p2, %p3054_p1 }
  0x13   :  { %p3057_p4 = pnand %p3056_p3, %p3050_p0 }
  0x15   :  { %3060 = shalt.err (!%p3057_p4)
}
  0x16   :  { %s3163_s18 = smov [#allocation6]   ;;  %s3061_s19 = scalar_lea.vmem %s79_s0, 16 }
  0x17   :  { %47 = dma.vmem_to_smem %s45_s27, 16, %s3163_s18, [#allocation7]  }
  0x18   :  { %p3062_p5 = scmp.ne.s32.totalorder %s79_s0, %s3061_s19  ;;  %p3066_p6 = scmp.lt.s32.totalorder %s79_s0, %s79_s0 }
  0x19   :  { %p3067_p7 = scmp.lt.s32.totalorder %s3061_s19, %s3061_s19 }
  0x1b   :  { %p3068_p8 = por %p3067_p7, %p3066_p6 }
  0x1d   :  { %p3069_p9 = pnand %p3068_p8, %p3062_p5 }
  0x1f   :  { %3072 = shalt.err (!%p3069_p9)
}
  0x20   :  { %s3164_s1 = smov [#allocation9]   ;;  %s3736_s21 = sld [smem:[#allocation20_spill]] }
  0x21   :  { %81 = dma.vmem_to_smem %s79_s0, 16, %s3164_s1, [#allocation10]  }
  0x22   :  { %s54_s25 = sshll.u32 %s3717_s2, 4  ;;  %s55_s25 = int_to_ptr.vmem [resolvable:$true] %s54_s25 }
  0x26   :  { %s34_s22 = sshll.u32 %s3736_s21, 4  ;;  %s35_s22 = int_to_ptr.vmem [resolvable:$true] %s34_s22 }
  0x27   :  { %s3073_s26 = scalar_lea.vmem %s35_s22, 16  ;;  %p3078_p11 = scmp.lt.s32.totalorder %s35_s22, %s35_s22 }
  0x28   :  { %p3074_p10 = scmp.ne.s32.totalorder %s35_s22, %s3073_s26  ;;  %p3079_p12 = scmp.lt.s32.totalorder %s3073_s26, %s3073_s26 }
  0x2a   :  { %p3080_p13 = por %p3079_p12, %p3078_p11 }
  0x2c   :  { %p3081_p0 = pnand %p3080_p13, %p3074_p10 }
  0x2e   :  { %3084 = shalt.err (!%p3081_p0)
}
  0x2f   :  { %s3165_s27 = smov [#allocation3]   ;;  %s3085_s28 = scalar_lea.vmem %s55_s25, 16 }
  0x30   :  { %37 = dma.vmem_to_smem %s35_s22, 16, %s3165_s27, [#allocation5]  }
  0x31   :  { %p3086_p1 = scmp.ne.s32.totalorder %s55_s25, %s3085_s28  ;;  %p3090_p2 = scmp.lt.s32.totalorder %s55_s25, %s55_s25 }
  0x32   :  { %p3091_p3 = scmp.lt.s32.totalorder %s3085_s28, %s3085_s28 }
  0x34   :  { %p3092_p4 = por %p3091_p3, %p3090_p2 }
  0x36   :  { %p3093_p5 = pnand %p3092_p4, %p3086_p1 }
  0x38   :  { %3096 = shalt.err (!%p3093_p5)
}
  0x39   :  { %s3166_s29 = smov [#allocation8]   ;;  %s96_s30 = sshll.u32 %s3730_s15, 4  ;;  %s97_s30 = int_to_ptr.vmem [resolvable:$true] %s96_s30 }
  0x3a   :  { %57 = dma.vmem_to_smem %s55_s25, 16, %s3166_s29, [#allocation7]  }
  0x3b   :  { %s3097_s18 = scalar_lea.vmem %s97_s30, 16  ;;  %p3102_p7 = scmp.lt.s32.totalorder %s97_s30, %s97_s30 }
  0x3c   :  { %p3098_p6 = scmp.ne.s32.totalorder %s97_s30, %s3097_s18  ;;  %p3103_p8 = scmp.lt.s32.totalorder %s3097_s18, %s3097_s18 }
  0x3e   :  { %p3104_p9 = por %p3103_p8, %p3102_p7 }
  0x40   :  { %p3105_p10 = pnand %p3104_p9, %p3098_p6 }
  0x42   :  { %3108 = shalt.err (!%p3105_p10)
}
  0x43   :  { %s3167_s19 = smov [#allocation11]  }
  0x44   :  { %99 = dma.vmem_to_smem %s97_s30, 16, %s3167_s19, [#allocation10]  }
  0x45   :  { %3153 = dma.done.wait [#allocation5], 16  }
  0x46   :  { %3154 = vsyncadd [#allocation5], 4294967280 }
  0x47   :  { %3155 = dma.done.wait [#allocation7], 32  }
  0x48   :  { %3156 = vsyncadd [#allocation7], 4294967264 }
  0x49   :  { %3157 = dma.done.wait [#allocation10], 32  }
  0x4a   :  { %3158 = vsyncadd [#allocation10], 4294967264 }
  0x4b   :  { %115 = sfence }
  0x4c   :  { %s3280_s1 = sld [smem:[#allocation3]]  ;;  %v3285_v0 = vld [vmem:[%s3718_s3] sm:$0xff]  ;;  %v3168_v1 = vmov 0   ;;  %s3352_s27 = sld [smem:[#allocation3 + $0x1]]  ;;  %v145_v61 = vlaneseq }
  0x4d   :  { %267 = vmatprep.mubr.bf16.mxu0 %v3168_v1  ;;  %118 = vst [vmem:[#allocation2] sm:$0xff] %v3285_v0  ;;  %v121_v31 = vpack.c.bf16 %v3285_v0, %v3285_v0  ;;  %s541_s24 = sld [smem:[#allocation8]] }
  0x4e   :  { %v146_v62 = vshrl.u32 %v145_v61, 7 }
  0x50   :  { %v3384_v63 = vsub.s32 0, %v146_v62 }
  0x52   :  { %s2611_s20 = sshll.u32 %s3280_s1, 7  ;;  %s2612_s3 = sshll.u32 %s3280_s1, 8 }
  0x53   :  { %s3293_s23 = scalar_lea.vmem %s3726_s11, %s2611_s20  ;;  %s3305_s26 = scalar_lea.vmem %s3728_s13, %s2612_s3 }
  0x54   :  { %v2721_v2 = vld [vmem:[%s3293_s23 + $0x4] ss:$8 sps:$4 sm:$0xff]   ;;  %v2723_v3 = vld [vmem:[%s3293_s23] ss:$8 sps:$4 sm:$0xff]   ;;  %v2724_v4 = vld [vmem:[%s3293_s23 + $0x14] ss:$8 sps:$4 sm:$0xff]  }
  0x55   :  { %235 = vmatprep.subr.bf16.mxu0 %v2721_v2  ;;  %v2726_v5 = vld [vmem:[%s3293_s23 + $0x10] ss:$8 sps:$4 sm:$0xff]   ;;  %v2727_v6 = vld [vmem:[%s3293_s23 + $0x24] ss:$8 sps:$4 sm:$0xff]   ;;  %v2729_v7 = vld [vmem:[%s3293_s23 + $0x20] ss:$8 sps:$4 sm:$0xff]  }
  0x56   :  { %236 = vmatpush1.bf16.msra.mxu0 %v2723_v3  ;;  %v2730_v8 = vld [vmem:[%s3293_s23 + $0x34] ss:$8 sps:$4 sm:$0xff]   ;;  %v2732_v9 = vld [vmem:[%s3293_s23 + $0x30] ss:$8 sps:$4 sm:$0xff]   ;;  %v2733_v10 = vld [vmem:[%s3293_s23 + $0x44] ss:$8 sps:$4 sm:$0xff]  }
  0x57   :  { %237 = vmatprep.subr.bf16.mxu0 %v2724_v4  ;;  %v2745_v11 = vld [vmem:[%s3305_s26 + $0x4] ss:$8 sps:$4 sm:$0xff]   ;;  %v2747_v12 = vld [vmem:[%s3305_s26] ss:$8 sps:$4 sm:$0xff]   ;;  %v2748_v13 = vld [vmem:[%s3305_s26 + $0x14] ss:$8 sps:$4 sm:$0xff]  }
  0x58   :  { %494 = vmatprep.subr.bf16.mxu1 %v2745_v11  ;;  %v2750_v14 = vld [vmem:[%s3305_s26 + $0x10] ss:$8 sps:$4 sm:$0xff]   ;;  %v2735_v15 = vld [vmem:[%s3293_s23 + $0x40] ss:$8 sps:$4 sm:$0xff]   ;;  %v2751_v16 = vld [vmem:[%s3305_s26 + $0x24] ss:$8 sps:$4 sm:$0xff]  }
  0x59   :  { %495 = vmatpush1.bf16.msra.mxu1 %v2747_v12  ;;  %v2736_v17 = vld [vmem:[%s3293_s23 + $0x54] ss:$8 sps:$4 sm:$0xff]   ;;  %v2753_v18 = vld [vmem:[%s3305_s26 + $0x20] ss:$8 sps:$4 sm:$0xff]   ;;  %v2738_v19 = vld [vmem:[%s3293_s23 + $0x50] ss:$8 sps:$4 sm:$0xff]  }
  0x5a   :  { %238 = vmatpush1.bf16.msra.mxu0 %v2726_v5  ;;  %496 = vmatprep.subr.bf16.mxu1 %v2748_v13  ;;  %v2754_v20 = vld [vmem:[%s3305_s26 + $0x34] ss:$8 sps:$4 sm:$0xff]   ;;  %v2739_v21 = vld [vmem:[%s3293_s23 + $0x64] ss:$8 sps:$4 sm:$0xff]   ;;  %v2756_v22 = vld [vmem:[%s3305_s26 + $0x30] ss:$8 sps:$4 sm:$0xff]  }
  0x5b   :  { %239 = vmatprep.subr.bf16.mxu0 %v2727_v6  ;;  %v2741_v23 = vld [vmem:[%s3293_s23 + $0x60] ss:$8 sps:$4 sm:$0xff]   ;;  %v2757_v24 = vld [vmem:[%s3305_s26 + $0x44] ss:$8 sps:$4 sm:$0xff]   ;;  %v2742_v25 = vld [vmem:[%s3293_s23 + $0x74] ss:$8 sps:$4 sm:$0xff]  }
  0x5c   :  { %v2759_v26 = vld [vmem:[%s3305_s26 + $0x40] ss:$8 sps:$4 sm:$0xff]   ;;  %v2744_v27 = vld [vmem:[%s3293_s23 + $0x70] ss:$8 sps:$4 sm:$0xff]   ;;  %v2760_v28 = vld [vmem:[%s3305_s26 + $0x54] ss:$8 sps:$4 sm:$0xff]  }
  0x5d   :  { %497 = vmatpush1.bf16.msra.mxu1 %v2750_v14  ;;  %v2762_v29 = vld [vmem:[%s3305_s26 + $0x50] ss:$8 sps:$4 sm:$0xff]   ;;  %v2763_v30 = vld [vmem:[%s3305_s26 + $0x64] ss:$8 sps:$4 sm:$0xff]   ;;  %v2765_v32 = vld [vmem:[%s3305_s26 + $0x60] ss:$8 sps:$4 sm:$0xff]  }
  0x5e   :  { %240 = vmatpush1.bf16.msra.mxu0 %v2729_v7  ;;  %498 = vmatprep.subr.bf16.mxu1 %v2751_v16  ;;  %v2766_v33 = vld [vmem:[%s3305_s26 + $0x74] ss:$8 sps:$4 sm:$0xff]   ;;  %v2768_v34 = vld [vmem:[%s3305_s26 + $0x70] ss:$8 sps:$4 sm:$0xff]   ;;  %v2769_v35 = vld [vmem:[%s3305_s26 + $0x84] ss:$8 sps:$4 sm:$0xff]  }
  0x5f   :  { %241 = vmatprep.subr.bf16.mxu0 %v2730_v8  ;;  %v2771_v36 = vld [vmem:[%s3305_s26 + $0x80] ss:$8 sps:$4 sm:$0xff]   ;;  %v2772_v37 = vld [vmem:[%s3305_s26 + $0x94] ss:$8 sps:$4 sm:$0xff]   ;;  %v2774_v38 = vld [vmem:[%s3305_s26 + $0x90] ss:$8 sps:$4 sm:$0xff]  }
  0x60   :  { %v2775_v39 = vld [vmem:[%s3305_s26 + $0xa4] ss:$8 sps:$4 sm:$0xff]   ;;  %v2777_v40 = vld [vmem:[%s3305_s26 + $0xa0] ss:$8 sps:$4 sm:$0xff]   ;;  %v2778_v41 = vld [vmem:[%s3305_s26 + $0xb4] ss:$8 sps:$4 sm:$0xff]  }
  0x61   :  { %499 = vmatpush1.bf16.msra.mxu1 %v2753_v18  ;;  %v2780_v42 = vld [vmem:[%s3305_s26 + $0xb0] ss:$8 sps:$4 sm:$0xff]   ;;  %v2781_v43 = vld [vmem:[%s3305_s26 + $0xc4] ss:$8 sps:$4 sm:$0xff]   ;;  %v2783_v44 = vld [vmem:[%s3305_s26 + $0xc0] ss:$8 sps:$4 sm:$0xff]  }
  0x62   :  { %242 = vmatpush1.bf16.msra.mxu0 %v2732_v9  ;;  %500 = vmatprep.subr.bf16.mxu1 %v2754_v20  ;;  %v2784_v45 = vld [vmem:[%s3305_s26 + $0xd4] ss:$8 sps:$4 sm:$0xff]   ;;  %v2786_v46 = vld [vmem:[%s3305_s26 + $0xd0] ss:$8 sps:$4 sm:$0xff]   ;;  %v2787_v47 = vld [vmem:[%s3305_s26 + $0xe4] ss:$8 sps:$4 sm:$0xff]  }
  0x63   :  { %243 = vmatprep.subr.bf16.mxu0 %v2733_v10  ;;  %v2789_v48 = vld [vmem:[%s3305_s26 + $0xe0] ss:$8 sps:$4 sm:$0xff]   ;;  %v2790_v49 = vld [vmem:[%s3305_s26 + $0xf4] ss:$8 sps:$4 sm:$0xff]   ;;  %v2792_v50 = vld [vmem:[%s3305_s26 + $0xf0] ss:$8 sps:$4 sm:$0xff]  }
  0x64   :  { %s2613_s28 = sshll.u32 %s3352_s27, 7  ;;  %s2614_s30 = sshll.u32 %s3352_s27, 8  ;;  %v3386_v2 = vsub.s32 1, %v146_v62 }
  0x65   :  { %501 = vmatpush1.bf16.msra.mxu1 %v2756_v22  ;;  %s3358_s0 = scalar_lea.vmem %s3726_s11, %s2613_s28  ;;  %s3370_s15 = scalar_lea.vmem %s3728_s13, %s2614_s30 }
  0x66   :  { %244 = vmatpush1.bf16.msra.mxu0 %v2735_v15  ;;  %502 = vmatprep.subr.bf16.mxu1 %v2757_v24  ;;  %v2793_v51 = vld [vmem:[%s3358_s0] ss:$8 sps:$4 sm:$0xff]   ;;  %v2795_v52 = vld [vmem:[%s3358_s0 + $0x4] ss:$8 sps:$4 sm:$0xff]   ;;  %v2798_v53 = vld [vmem:[%s3358_s0 + $0x14] ss:$8 sps:$4 sm:$0xff]  }
  0x67   :  { %245 = vmatprep.subr.bf16.mxu0 %v2736_v17  ;;  %v2796_v54 = vld [vmem:[%s3358_s0 + $0x10] ss:$8 sps:$4 sm:$0xff]   ;;  %v2801_v55 = vld [vmem:[%s3358_s0 + $0x24] ss:$8 sps:$4 sm:$0xff]   ;;  %v2799_v56 = vld [vmem:[%s3358_s0 + $0x20] ss:$8 sps:$4 sm:$0xff]  }
  0x68   :  { %v2804_v57 = vld [vmem:[%s3358_s0 + $0x34] ss:$8 sps:$4 sm:$0xff]   ;;  %v2802_v58 = vld [vmem:[%s3358_s0 + $0x30] ss:$8 sps:$4 sm:$0xff]   ;;  %v2807_v59 = vld [vmem:[%s3358_s0 + $0x44] ss:$8 sps:$4 sm:$0xff]  }
  0x69   :  { %503 = vmatpush1.bf16.msra.mxu1 %v2759_v26  ;;  %v2805_v60 = vld [vmem:[%s3358_s0 + $0x40] ss:$8 sps:$4 sm:$0xff]   ;;  %s2356_s10 = sshll.u32 %s3280_s1, 1  ;;  %s276_s23 = sld [smem:[#allocation11 + %s3280_s1]]  ;;  %v2810_v18 = vld [vmem:[%s3358_s0 + $0x54] ss:$8 sps:$4 sm:$0xff]  }
  0x6a   :  { %246 = vmatpush1.bf16.msra.mxu0 %v2738_v19  ;;  %504 = vmatprep.subr.bf16.mxu1 %v2760_v28  ;;  %s142_s22 = scalar_lea.vmem %s3727_s12, %s2356_s10  ;;  %v2808_v19 = vld [vmem:[%s3358_s0 + $0x50] ss:$8 sps:$4 sm:$0xff]   ;;  %v2811_v20 = vld [vmem:[%s3358_s0 + $0x60] ss:$8 sps:$4 sm:$0xff]   ;;  %v2816_v22 = vld [vmem:[%s3358_s0 + $0x74] ss:$8 sps:$4 sm:$0xff]   ;;  %s321_s28 = scalar_lea.vmem %s3729_s14, %s2356_s10 }
  0x6b   :  { %247 = vmatprep.subr.bf16.mxu0 %v2739_v21  ;;  %v143_v0 = vld [vmem:[%s142_s22] sm:$0x3]  ;;  %v2813_v21 = vld [vmem:[%s3358_s0 + $0x64] ss:$8 sps:$4 sm:$0xff]   ;;  %s537_s3 = sld [smem:[#allocation6]]  ;;  %s2408_s2 = sshll.u32 %s541_s24, 3 }
  0x6c   :  { %v148_v3 = vrot.slane %v143_v0, %v3384_v63  ;;  %v152_v4 = vrot.slane %v143_v0, %v3386_v2  ;;  %v2819_v24 = vld [vmem:[%s3370_s15 + $0x4] ss:$8 sps:$4 sm:$0xff]   ;;  %v2858_v62 = vld [vmem:[%s3370_s15 + $0xd4] ss:$8 sps:$4 sm:$0xff]   ;;  %v2856_v0 = vld [vmem:[%s3370_s15 + $0xd0] ss:$8 sps:$4 sm:$0xff]  }
  0x6d   :  { %505 = vmatpush1.bf16.msra.mxu1 %v2762_v29  ;;  %s3436_s30 = sld [smem:[#allocation3 + $0x2]] }
  0x6e   :  { %248 = vmatpush1.bf16.msra.mxu0 %v2741_v23  ;;  %506 = vmatprep.subr.bf16.mxu1 %v2763_v30  ;;  %v2814_v23 = vld [vmem:[%s3358_s0 + $0x70] ss:$8 sps:$4 sm:$0xff]   ;;  %s543_s0 = scalar_lea.vmem [#allocation2], %s2408_s2  ;;  %s2465_s2 = sld [smem:[#allocation8 + $0x1]] }
  0x6f   :  { %249 = vmatprep.subr.bf16.mxu0 %v2742_v25  ;;  %v279_v6 = vstv %s276_s23  ;;  %v322_v25 = vld [vmem:[%s321_s28] sm:$0x3]  ;;  %s702_s28 = sld [smem:[#allocation11 + %s3352_s27]] }
  0x70   :  { %v327_v26 = vrot.slane %v322_v25, %v3384_v63 }
  0x71   :  { %507 = vmatpush1.bf16.msra.mxu1 %v2765_v32  ;;  %s2407_s29 = sshll.u32 %s537_s3, 3  ;;  %s2412_s3 = sshll.u32 %s3352_s27, 1 }
  0x72   :  { %250 = vmatpush1.bf16.msra.mxu0 %v2744_v27  ;;  %508 = vmatprep.subr.bf16.mxu1 %v2766_v33  ;;  %v331_v27 = vrot.slane %v322_v25, %v3386_v2  ;;  %s539_s1 = scalar_lea.vmem [#allocation2], %s2407_s29  ;;  %s568_s26 = scalar_lea.vmem %s3727_s12, %s2412_s3 }
  0x73   :  { %661 = vmatprep.subr.bf16.mxu0 %v2795_v52  ;;  %v2841_v52 = vld [vmem:[%s3370_s15 + $0x80] ss:$8 sps:$4 sm:$0xff]   ;;  %s2615_s18 = sshll.u32 %s3436_s30, 7  ;;  %s2463_s29 = sld [smem:[#allocation6 + $0x1]] }
  0x74   :  { %s3442_s20 = scalar_lea.vmem %s3726_s11, %s2615_s18  ;;  %s747_s18 = scalar_lea.vmem %s3729_s14, %s2412_s3 }
  0x75   :  { %268 = vmatmul.mubr.bf16.vlgmr.msra.gmra.mrb[0].mxu0 %v121_v31  ;;  %509 = vmatpush1.bf16.msra.mxu1 %v2768_v34  ;;  %s2466_s10 = sshll.u32 %s2465_s2, 3 }
  0x76   :  { %693 = vmatprep.mubr.bf16.mxu0 %v3168_v1  ;;  %510 = vmatprep.subr.bf16.mxu1 %v2769_v35  ;;  %v2817_v35 = vld [vmem:[%s3370_s15] ss:$8 sps:$4 sm:$0xff]  }
  0x77   :  { %662 = vmatpush1.bf16.msra.mxu0 %v2793_v51  ;;  %v2843_v51 = vld [vmem:[%s3370_s15 + $0x84] ss:$8 sps:$4 sm:$0xff]  }
  0x78   :  { %663 = vmatprep.subr.bf16.mxu0 %v2798_v53  ;;  %v2846_v53 = vld [vmem:[%s3370_s15 + $0x94] ss:$8 sps:$4 sm:$0xff]  }
  0x79   :  { %511 = vmatpush1.bf16.msra.mxu1 %v2771_v36  ;;  %s2464_s19 = sshll.u32 %s2463_s29, 3 }
  0x7a   :  { %512 = vmatprep.subr.bf16.mxu1 %v2772_v37  ;;  %v2822_v37 = vld [vmem:[%s3370_s15 + $0x14] ss:$8 sps:$4 sm:$0xff]   ;;  %s966_s27 = scalar_lea.vmem [#allocation2], %s2464_s19 }
  0x7b   :  { %664 = vmatpush1.bf16.msra.mxu0 %v2796_v54  ;;  %v2844_v54 = vld [vmem:[%s3370_s15 + $0x90] ss:$8 sps:$4 sm:$0xff]  }
  0x7c   :  { %665 = vmatprep.subr.bf16.mxu0 %v2801_v55  ;;  %v2849_v55 = vld [vmem:[%s3370_s15 + $0xa4] ss:$8 sps:$4 sm:$0xff]  }
  0x7d   :  { %513 = vmatpush1.bf16.msra.mxu1 %v2774_v38  ;;  %v2820_v38 = vld [vmem:[%s3370_s15 + $0x10] ss:$8 sps:$4 sm:$0xff]  }
  0x7e   :  { %514 = vmatprep.subr.bf16.mxu1 %v2775_v39  ;;  %v2825_v39 = vld [vmem:[%s3370_s15 + $0x24] ss:$8 sps:$4 sm:$0xff]  }
  0x7f   :  { %666 = vmatpush1.bf16.msra.mxu0 %v2799_v56  ;;  %v2847_v56 = vld [vmem:[%s3370_s15 + $0xa0] ss:$8 sps:$4 sm:$0xff]  }
  0x80   :  { %667 = vmatprep.subr.bf16.mxu0 %v2804_v57  ;;  %v2852_v57 = vld [vmem:[%s3370_s15 + $0xb4] ss:$8 sps:$4 sm:$0xff]  }
  0x81   :  { %515 = vmatpush1.bf16.msra.mxu1 %v2777_v40  ;;  %v2823_v40 = vld [vmem:[%s3370_s15 + $0x20] ss:$8 sps:$4 sm:$0xff]  }
  0x82   :  { %516 = vmatprep.subr.bf16.mxu1 %v2778_v41  ;;  %v2828_v41 = vld [vmem:[%s3370_s15 + $0x34] ss:$8 sps:$4 sm:$0xff]  }
  0x83   :  { %668 = vmatpush1.bf16.msra.mxu0 %v2802_v58  ;;  %v2850_v58 = vld [vmem:[%s3370_s15 + $0xb0] ss:$8 sps:$4 sm:$0xff]  }
  0x84   :  { %669 = vmatprep.subr.bf16.mxu0 %v2807_v59  ;;  %v2855_v59 = vld [vmem:[%s3370_s15 + $0xc4] ss:$8 sps:$4 sm:$0xff]  }
  0x85   :  { %517 = vmatpush1.bf16.msra.mxu1 %v2780_v42  ;;  %v2826_v42 = vld [vmem:[%s3370_s15 + $0x30] ss:$8 sps:$4 sm:$0xff]  }
  0x86   :  { %518 = vmatprep.subr.bf16.mxu1 %v2781_v43  ;;  %v2831_v43 = vld [vmem:[%s3370_s15 + $0x44] ss:$8 sps:$4 sm:$0xff]  }
  0x87   :  { %670 = vmatpush1.bf16.msra.mxu0 %v2805_v60  ;;  %v2853_v60 = vld [vmem:[%s3370_s15 + $0xc0] ss:$8 sps:$4 sm:$0xff]  }
  0x88   :  { %671 = vmatprep.subr.bf16.mxu0 %v2810_v18 }
  0x89   :  { %519 = vmatpush1.bf16.msra.mxu1 %v2783_v44  ;;  %v2829_v44 = vld [vmem:[%s3370_s15 + $0x40] ss:$8 sps:$4 sm:$0xff]  }
  0x8a   :  { %520 = vmatprep.subr.bf16.mxu1 %v2784_v45  ;;  %v2834_v45 = vld [vmem:[%s3370_s15 + $0x54] ss:$8 sps:$4 sm:$0xff]  }
  0x8b   :  { %672 = vmatpush1.bf16.msra.mxu0 %v2808_v19 }
  0x8c   :  { %673 = vmatprep.subr.bf16.mxu0 %v2813_v21  ;;  %v705_v21 = vstv %s702_s28  ;;  %s2470_s28 = sshll.u32 %s3436_s30, 1 }
  0x8d   :  { %521 = vmatpush1.bf16.msra.mxu1 %v2786_v46  ;;  %v2832_v46 = vld [vmem:[%s3370_s15 + $0x50] ss:$8 sps:$4 sm:$0xff]  }
  0x8e   :  { %522 = vmatprep.subr.bf16.mxu1 %v2787_v47  ;;  %v2837_v47 = vld [vmem:[%s3370_s15 + $0x64] ss:$8 sps:$4 sm:$0xff]  }
  0x8f   :  { %674 = vmatpush1.bf16.msra.mxu0 %v2811_v20 }
  0x90   :  { %675 = vmatprep.subr.bf16.mxu0 %v2816_v22 }
  0x91   :  { %523 = vmatpush1.bf16.msra.mxu1 %v2789_v48  ;;  %v2835_v48 = vld [vmem:[%s3370_s15 + $0x60] ss:$8 sps:$4 sm:$0xff]  }
  0x92   :  { %524 = vmatprep.subr.bf16.mxu1 %v2790_v49  ;;  %v2840_v49 = vld [vmem:[%s3370_s15 + $0x74] ss:$8 sps:$4 sm:$0xff]  }
  0x93   :  { %676 = vmatpush1.bf16.msra.mxu0 %v2814_v23 }
  0x94   :  { %920 = vmatprep.subr.bf16.mxu0 %v2819_v24 }
  0x95   :  { %525 = vmatpush1.bf16.msra.mxu1 %v2792_v50  ;;  %v2838_v50 = vld [vmem:[%s3370_s15 + $0x70] ss:$8 sps:$4 sm:$0xff]  }
 0x148   :  { %v269_v5 = vpop.f32.mrb[0].mxu0 }
 0x149   :  { %v270_v7 = vadd.f32 %v269_v5, %v148_v3  ;;  %v271_v8 = vpop.f32.mrb[1].mxu0  ;;  %v2861_v3 = vld [vmem:[%s3370_s15 + $0xe4] ss:$8 sps:$4 sm:$0xff]   ;;  %v2864_v5 = vld [vmem:[%s3370_s15 + $0xf4] ss:$8 sps:$4 sm:$0xff]  }
 0x14a   :  { %v272_v9 = vadd.f32 %v271_v8, %v152_v4  ;;  %v273_v10 = vpop.f32.mrb[2].mxu0  ;;  %v2859_v4 = vld [vmem:[%s3370_s15 + $0xe0] ss:$8 sps:$4 sm:$0xff]   ;;  %v2867_v8 = vld [vmem:[%s3442_s20 + $0x4] ss:$8 sps:$4 sm:$0xff]  }
 0x14b   :  { %vm277_vm0 = vcmp.gt.f32.partialorder %v270_v7, 0.0  ;;  %v280_v11 = vmul.f32 %v279_v6, %v270_v7  ;;  %v274_v12 = vpop.f32.mrb[3].mxu0  ;;  %1088 = vmatprep.subr.bf16.mxu1 %v2867_v8  ;;  %v2868_v10 = vld [vmem:[%s3442_s20 + $0x10] ss:$8 sps:$4 sm:$0xff]  }
 0x14c   :  { %vm278_vm1 = vcmp.gt.f32.partialorder %v272_v9, 0.0  ;;  %v281_v13 = vmul.f32 %v279_v6, %v272_v9  ;;  %v2862_v6 = vld [vmem:[%s3370_s15 + $0xf0] ss:$8 sps:$4 sm:$0xff]   ;;  %s2616_s15 = sshll.u32 %s3436_s30, 8  ;;  %v2871_v12 = vld [vmem:[%s3442_s20 + $0x20] ss:$8 sps:$4 sm:$0xff]  }
 0x14d   :  { %v282_v14 = vsel %vm277_vm0, %v270_v7, %v280_v11  ;;  %v2865_v7 = vld [vmem:[%s3442_s20] ss:$8 sps:$4 sm:$0xff]   ;;  %v2873_v11 = vld [vmem:[%s3442_s20 + $0x24] ss:$8 sps:$4 sm:$0xff]   ;;  %s3454_s23 = scalar_lea.vmem %s3728_s13, %s2616_s15  ;;  %s3515_s15 = sld [smem:[#allocation3 + $0x3]] }
 0x14e   :  { %v283_v15 = vsel %vm278_vm1, %v272_v9, %v281_v13  ;;  %v284_v17 = vpack.c.bf16 %v282_v14, %v282_v14  ;;  %v2870_v9 = vld [vmem:[%s3442_s20 + $0x14] ss:$8 sps:$4 sm:$0xff]   ;;  %v2874_v14 = vld [vmem:[%s3442_s20 + $0x30] ss:$8 sps:$4 sm:$0xff]  }
 0x14f   :  { %v285_v16 = vpack.c.bf16 %v283_v15, %v283_v15  ;;  %v2876_v13 = vld [vmem:[%s3442_s20 + $0x34] ss:$8 sps:$4 sm:$0xff]   ;;  %v2879_v15 = vld [vmem:[%s3442_s20 + $0x44] ss:$8 sps:$4 sm:$0xff]   ;;  %v2916_v8 = vld [vmem:[%s3454_s23 + $0x90] ss:$8 sps:$4 sm:$0xff]  }
 0x151   :  { %526 = vmatprep.mubr.bf16.mxu1 %v285_v16  ;;  %v2877_v16 = vld [vmem:[%s3442_s20 + $0x40] ss:$8 sps:$4 sm:$0xff]  }
 0x152   :  { %527 = vmatmul.mubr.bf16.vlgmr.msra.gmra.mrb[0].mxu1 %v284_v17  ;;  %v569_v17 = vld [vmem:[%s568_s26] sm:$0x3] }
 0x153   :  { %1120 = vmatprep.mubr.bf16.mxu1 %v3168_v1  ;;  %1089 = vmatpush1.bf16.msra.mxu1 %v2865_v7  ;;  %v574_v18 = vrot.slane %v569_v17, %v3384_v63  ;;  %v578_v19 = vrot.slane %v569_v17, %v3386_v2  ;;  %v2918_v7 = vld [vmem:[%s3454_s23 + $0x94] ss:$8 sps:$4 sm:$0xff]   ;;  %v2933_v17 = vld [vmem:[%s3454_s23 + $0xe4] ss:$8 sps:$4 sm:$0xff]   ;;  %s2617_s21 = sshll.u32 %s3515_s15, 7 }
 0x154   :  { %1090 = vmatprep.subr.bf16.mxu1 %v2870_v9  ;;  %v2921_v9 = vld [vmem:[%s3454_s23 + $0xa4] ss:$8 sps:$4 sm:$0xff]   ;;  %s3521_s24 = scalar_lea.vmem %s3726_s11, %s2617_s21  ;;  %s2581_s11 = sld [smem:[#allocation8 + $0x3]] }
 0x157   :  { %1091 = vmatpush1.bf16.msra.mxu1 %v2868_v10  ;;  %v2919_v10 = vld [vmem:[%s3454_s23 + $0xa0] ss:$8 sps:$4 sm:$0xff]  }
 0x158   :  { %1092 = vmatprep.subr.bf16.mxu1 %v2873_v11  ;;  %v2924_v11 = vld [vmem:[%s3454_s23 + $0xb4] ss:$8 sps:$4 sm:$0xff]  }
 0x15a   :  { %s2582_s29 = sshll.u32 %s2581_s11, 3 }
 0x15b   :  { %1093 = vmatpush1.bf16.msra.mxu1 %v2871_v12  ;;  %v2922_v12 = vld [vmem:[%s3454_s23 + $0xb0] ss:$8 sps:$4 sm:$0xff]  }
 0x15c   :  { %1094 = vmatprep.subr.bf16.mxu1 %v2876_v13  ;;  %v2927_v13 = vld [vmem:[%s3454_s23 + $0xc4] ss:$8 sps:$4 sm:$0xff]  }
 0x15f   :  { %1095 = vmatpush1.bf16.msra.mxu1 %v2874_v14  ;;  %v2925_v14 = vld [vmem:[%s3454_s23 + $0xc0] ss:$8 sps:$4 sm:$0xff]  }
 0x160   :  { %1096 = vmatprep.subr.bf16.mxu1 %v2879_v15  ;;  %v2930_v15 = vld [vmem:[%s3454_s23 + $0xd4] ss:$8 sps:$4 sm:$0xff]  }
 0x163   :  { %1097 = vmatpush1.bf16.msra.mxu1 %v2877_v16  ;;  %v2928_v16 = vld [vmem:[%s3454_s23 + $0xd0] ss:$8 sps:$4 sm:$0xff]  }
 0x225   :  { %v528_v28 = vpop.f32.mrb[0].mxu1 }
 0x226   :  { %v529_v29 = vadd.f32 %v528_v28, %v327_v26  ;;  %v530_v30 = vpop.f32.mrb[1].mxu1 }
 0x227   :  { %v531_v31 = vadd.f32 %v530_v30, %v331_v27  ;;  %v532_v32 = vpop.f32.mrb[2].mxu1 }
 0x228   :  { %535 = vst [vmem:[#allocation13] sm:$0xff] %v529_v29  ;;  %540 = vst [vmem:[%s539_s1] sm:$0xff] %v529_v29  ;;  %v533_v33 = vpop.f32.mrb[3].mxu1  ;;  %s995_s1 = scalar_lea.vmem %s3727_s12, %s2470_s28 }
 0x229   :  { %536 = vst [vmem:[#allocation13 + $0x8] sm:$0xff] %v531_v31  ;;  %544 = vst [vmem:[%s543_s0] sm:$0xff] %v531_v31  ;;  %v2882_v33 = vld [vmem:[%s3442_s20 + $0x54] ss:$8 sps:$4 sm:$0xff]   ;;  %s1129_s0 = sld [smem:[#allocation11 + %s3436_s30]] }
 0x22a   :  { %1098 = vmatprep.subr.bf16.mxu1 %v2882_v33 }
 0x230   :  { %v546_v34 = vld [vmem:[#allocation2 + $0x8] sm:$0xff] }
 0x231   :  { %v547_v36 = vpack.c.bf16 %v546_v34, %v546_v34  ;;  %v2880_v34 = vld [vmem:[%s3442_s20 + $0x50] ss:$8 sps:$4 sm:$0xff]  }
 0x232   :  { %1099 = vmatpush1.bf16.msra.mxu1 %v2880_v34 }
 0x233   :  { %694 = vmatmul.mubr.bf16.vlgmr.msra.gmra.mrb[4].mxu0 %v547_v36  ;;  %v2885_v36 = vld [vmem:[%s3442_s20 + $0x64] ss:$8 sps:$4 sm:$0xff]  }
 0x234   :  { %921 = vmatpush1.bf16.msra.mxu0 %v2817_v35  ;;  %v2883_v35 = vld [vmem:[%s3442_s20 + $0x60] ss:$8 sps:$4 sm:$0xff]   ;;  %1100 = vmatprep.subr.bf16.mxu1 %v2885_v36 }
 0x235   :  { %922 = vmatprep.subr.bf16.mxu0 %v2822_v37  ;;  %v2888_v37 = vld [vmem:[%s3442_s20 + $0x74] ss:$8 sps:$4 sm:$0xff]  }
 0x236   :  { %1101 = vmatpush1.bf16.msra.mxu1 %v2883_v35  ;;  %v1132_v35 = vstv %s1129_s0  ;;  %s2528_s0 = sshll.u32 %s3515_s15, 1 }
 0x237   :  { %1102 = vmatprep.subr.bf16.mxu1 %v2888_v37  ;;  %s1422_s19 = scalar_lea.vmem %s3727_s12, %s2528_s0  ;;  %s2601_s12 = sld [smem:[#allocation9 + $0x1]] }
 0x238   :  { %923 = vmatpush1.bf16.msra.mxu0 %v2820_v38  ;;  %v2886_v38 = vld [vmem:[%s3442_s20 + $0x70] ss:$8 sps:$4 sm:$0xff]   ;;  %s970_s20 = scalar_lea.vmem [#allocation2], %s2466_s10  ;;  %s1556_s10 = sld [smem:[#allocation11 + %s3515_s15]] }
 0x239   :  { %924 = vmatprep.subr.bf16.mxu0 %v2825_v39  ;;  %v2891_v39 = vld [vmem:[%s3454_s23 + $0x4] ss:$8 sps:$4 sm:$0xff]  }
 0x23a   :  { %1103 = vmatpush1.bf16.msra.mxu1 %v2886_v38 }
 0x23b   :  { %1347 = vmatprep.subr.bf16.mxu1 %v2891_v39 }
 0x23c   :  { %925 = vmatpush1.bf16.msra.mxu0 %v2823_v40 }
 0x23d   :  { %926 = vmatprep.subr.bf16.mxu0 %v2828_v41 }
 0x240   :  { %927 = vmatpush1.bf16.msra.mxu0 %v2826_v42 }
 0x241   :  { %928 = vmatprep.subr.bf16.mxu0 %v2831_v43 }
 0x244   :  { %929 = vmatpush1.bf16.msra.mxu0 %v2829_v44 }
 0x245   :  { %930 = vmatprep.subr.bf16.mxu0 %v2834_v45 }
 0x248   :  { %931 = vmatpush1.bf16.msra.mxu0 %v2832_v46 }
 0x249   :  { %932 = vmatprep.subr.bf16.mxu0 %v2837_v47 }
 0x24c   :  { %933 = vmatpush1.bf16.msra.mxu0 %v2835_v48 }
 0x24d   :  { %934 = vmatprep.subr.bf16.mxu0 %v2840_v49  ;;  %v2889_v49 = vld [vmem:[%s3454_s23] ss:$8 sps:$4 sm:$0xff]  }
 0x250   :  { %935 = vmatpush1.bf16.msra.mxu0 %v2838_v50 }
 0x251   :  { %936 = vmatprep.subr.bf16.mxu0 %v2843_v51  ;;  %v2894_v51 = vld [vmem:[%s3454_s23 + $0x14] ss:$8 sps:$4 sm:$0xff]  }
 0x254   :  { %937 = vmatpush1.bf16.msra.mxu0 %v2841_v52  ;;  %v2892_v52 = vld [vmem:[%s3454_s23 + $0x10] ss:$8 sps:$4 sm:$0xff]  }
 0x255   :  { %938 = vmatprep.subr.bf16.mxu0 %v2846_v53  ;;  %v2897_v53 = vld [vmem:[%s3454_s23 + $0x24] ss:$8 sps:$4 sm:$0xff]  }
 0x258   :  { %939 = vmatpush1.bf16.msra.mxu0 %v2844_v54  ;;  %v2895_v54 = vld [vmem:[%s3454_s23 + $0x20] ss:$8 sps:$4 sm:$0xff]  }
 0x259   :  { %940 = vmatprep.subr.bf16.mxu0 %v2849_v55  ;;  %v2900_v55 = vld [vmem:[%s3454_s23 + $0x34] ss:$8 sps:$4 sm:$0xff]  }
 0x25c   :  { %941 = vmatpush1.bf16.msra.mxu0 %v2847_v56  ;;  %v2898_v56 = vld [vmem:[%s3454_s23 + $0x30] ss:$8 sps:$4 sm:$0xff]  }
 0x25d   :  { %942 = vmatprep.subr.bf16.mxu0 %v2852_v57  ;;  %v2903_v57 = vld [vmem:[%s3454_s23 + $0x44] ss:$8 sps:$4 sm:$0xff]  }
 0x260   :  { %943 = vmatpush1.bf16.msra.mxu0 %v2850_v58  ;;  %v2901_v58 = vld [vmem:[%s3454_s23 + $0x40] ss:$8 sps:$4 sm:$0xff]  }
 0x261   :  { %944 = vmatprep.subr.bf16.mxu0 %v2855_v59  ;;  %v2906_v59 = vld [vmem:[%s3454_s23 + $0x54] ss:$8 sps:$4 sm:$0xff]  }
 0x264   :  { %945 = vmatpush1.bf16.msra.mxu0 %v2853_v60  ;;  %v2904_v60 = vld [vmem:[%s3454_s23 + $0x50] ss:$8 sps:$4 sm:$0xff]  }
 0x265   :  { %946 = vmatprep.subr.bf16.mxu0 %v2858_v62  ;;  %v2909_v62 = vld [vmem:[%s3454_s23 + $0x64] ss:$8 sps:$4 sm:$0xff]  }
 0x268   :  { %947 = vmatpush1.bf16.msra.mxu0 %v2856_v0  ;;  %v2907_v0 = vld [vmem:[%s3454_s23 + $0x60] ss:$8 sps:$4 sm:$0xff]  }
 0x269   :  { %948 = vmatprep.subr.bf16.mxu0 %v2861_v3  ;;  %v2912_v3 = vld [vmem:[%s3454_s23 + $0x74] ss:$8 sps:$4 sm:$0xff]  }
 0x26c   :  { %949 = vmatpush1.bf16.msra.mxu0 %v2859_v4  ;;  %v2910_v4 = vld [vmem:[%s3454_s23 + $0x70] ss:$8 sps:$4 sm:$0xff]  }
 0x26d   :  { %950 = vmatprep.subr.bf16.mxu0 %v2864_v5  ;;  %v2915_v5 = vld [vmem:[%s3454_s23 + $0x84] ss:$8 sps:$4 sm:$0xff]  }
 0x270   :  { %951 = vmatpush1.bf16.msra.mxu0 %v2862_v6  ;;  %v2913_v6 = vld [vmem:[%s3454_s23 + $0x80] ss:$8 sps:$4 sm:$0xff]  }
 0x306   :  { %v695_v20 = vpop.f32.mrb[4].mxu0 }
 0x307   :  { %v696_v22 = vadd.f32 %v695_v20, %v574_v18  ;;  %v697_v23 = vpop.f32.mrb[5].mxu0  ;;  %v2931_v18 = vld [vmem:[%s3454_s23 + $0xe0] ss:$8 sps:$4 sm:$0xff]   ;;  %v2934_v20 = vld [vmem:[%s3454_s23 + $0xf0] ss:$8 sps:$4 sm:$0xff]  }
 0x308   :  { %v698_v24 = vadd.f32 %v697_v23, %v578_v19  ;;  %v699_v25 = vpop.f32.mrb[6].mxu0  ;;  %v2936_v19 = vld [vmem:[%s3454_s23 + $0xf4] ss:$8 sps:$4 sm:$0xff]   ;;  %s2618_s23 = sshll.u32 %s3515_s15, 8  ;;  %s1824_s15 = scalar_lea.vmem [#allocation2], %s2582_s29 }
 0x309   :  { %vm703_vm2 = vcmp.gt.f32.partialorder %v696_v22, 0.0  ;;  %v706_v26 = vmul.f32 %v705_v21, %v696_v22  ;;  %v700_v27 = vpop.f32.mrb[7].mxu0  ;;  %v2942_v23 = vld [vmem:[%s3521_s24 + $0x14] ss:$8 sps:$4 sm:$0xff]   ;;  %v2945_v25 = vld [vmem:[%s3521_s24 + $0x24] ss:$8 sps:$4 sm:$0xff]   ;;  %s3533_s26 = scalar_lea.vmem %s3728_s13, %s2618_s23 }
 0x30a   :  { %vm704_vm3 = vcmp.gt.f32.partialorder %v698_v24, 0.0  ;;  %v707_v28 = vmul.f32 %v705_v21, %v698_v24  ;;  %v2937_v21 = vld [vmem:[%s3521_s24] ss:$8 sps:$4 sm:$0xff]   ;;  %v2948_v27 = vld [vmem:[%s3521_s24 + $0x34] ss:$8 sps:$4 sm:$0xff]   ;;  %s2521_s13 = sld [smem:[#allocation6 + $0x2]] }
 0x30b   :  { %v708_v29 = vsel %vm703_vm2, %v696_v22, %v706_v26  ;;  %v2939_v22 = vld [vmem:[%s3521_s24 + $0x4] ss:$8 sps:$4 sm:$0xff]   ;;  %v2943_v26 = vld [vmem:[%s3521_s24 + $0x20] ss:$8 sps:$4 sm:$0xff]   ;;  %s2579_s23 = sld [smem:[#allocation6 + $0x3]] }
 0x30c   :  { %v709_v30 = vsel %vm704_vm3, %v698_v24, %v707_v28  ;;  %v710_v32 = vpack.c.bf16 %v708_v29, %v708_v29  ;;  %1515 = vmatprep.subr.bf16.mxu0 %v2939_v22  ;;  %v2940_v24 = vld [vmem:[%s3521_s24 + $0x10] ss:$8 sps:$4 sm:$0xff]   ;;  %v2951_v29 = vld [vmem:[%s3521_s24 + $0x44] ss:$8 sps:$4 sm:$0xff]  }
 0x30d   :  { %v711_v31 = vpack.c.bf16 %v709_v30, %v709_v30  ;;  %v2946_v28 = vld [vmem:[%s3521_s24 + $0x30] ss:$8 sps:$4 sm:$0xff]   ;;  %v2949_v30 = vld [vmem:[%s3521_s24 + $0x40] ss:$8 sps:$4 sm:$0xff]  }
 0x30e   :  { %v2988_v22 = vld [vmem:[%s3533_s26 + $0x90] ss:$8 sps:$4 sm:$0xff]  }
 0x30f   :  { %952 = vmatprep.mubr.bf16.mxu0 %v711_v31  ;;  %v996_v31 = vld [vmem:[%s995_s1] sm:$0x3] }
 0x310   :  { %953 = vmatmul.mubr.bf16.vlgmr.msra.gmra.mrb[8].mxu0 %v710_v32  ;;  %v1001_v32 = vrot.slane %v996_v31, %v3384_v63  ;;  %v1005_v33 = vrot.slane %v996_v31, %v3386_v2  ;;  %v3005_v31 = vld [vmem:[%s3533_s26 + $0xe4] ss:$8 sps:$4 sm:$0xff]  }
 0x311   :  { %1547 = vmatprep.mubr.bf16.mxu0 %v3168_v1  ;;  %v748_v1 = vld [vmem:[%s747_s18] sm:$0x3]  ;;  %1516 = vmatpush1.bf16.msra.mxu0 %v2937_v21  ;;  %s2523_s18 = sld [smem:[#allocation8 + $0x2]]  ;;  %v2990_v21 = vld [vmem:[%s3533_s26 + $0x94] ss:$8 sps:$4 sm:$0xff]  }
 0x312   :  { %v753_v40 = vrot.slane %v748_v1, %v3384_v63  ;;  %v757_v41 = vrot.slane %v748_v1, %v3386_v2  ;;  %1517 = vmatprep.subr.bf16.mxu0 %v2942_v23  ;;  %v2993_v23 = vld [vmem:[%s3533_s26 + $0xa4] ss:$8 sps:$4 sm:$0xff]  }
 0x315   :  { %1518 = vmatpush1.bf16.msra.mxu0 %v2940_v24  ;;  %v2991_v24 = vld [vmem:[%s3533_s26 + $0xa0] ss:$8 sps:$4 sm:$0xff]  }
 0x316   :  { %1519 = vmatprep.subr.bf16.mxu0 %v2945_v25  ;;  %v2996_v25 = vld [vmem:[%s3533_s26 + $0xb4] ss:$8 sps:$4 sm:$0xff]  }
 0x317   :  { %s2524_s21 = sshll.u32 %s2523_s18, 3 }
 0x318   :  { %s1397_s22 = scalar_lea.vmem [#allocation2], %s2524_s21 }
 0x319   :  { %1520 = vmatpush1.bf16.msra.mxu0 %v2943_v26  ;;  %v2994_v26 = vld [vmem:[%s3533_s26 + $0xb0] ss:$8 sps:$4 sm:$0xff]  }
 0x31a   :  { %1521 = vmatprep.subr.bf16.mxu0 %v2948_v27  ;;  %v2999_v27 = vld [vmem:[%s3533_s26 + $0xc4] ss:$8 sps:$4 sm:$0xff]  }
 0x31d   :  { %1522 = vmatpush1.bf16.msra.mxu0 %v2946_v28  ;;  %v2997_v28 = vld [vmem:[%s3533_s26 + $0xc0] ss:$8 sps:$4 sm:$0xff]  }
 0x31e   :  { %1523 = vmatprep.subr.bf16.mxu0 %v2951_v29  ;;  %v3002_v29 = vld [vmem:[%s3533_s26 + $0xd4] ss:$8 sps:$4 sm:$0xff]  }
 0x321   :  { %1524 = vmatpush1.bf16.msra.mxu0 %v2949_v30  ;;  %v3000_v30 = vld [vmem:[%s3533_s26 + $0xd0] ss:$8 sps:$4 sm:$0xff]  }
 0x3e3   :  { %v954_v42 = vpop.f32.mrb[8].mxu0 }
 0x3e4   :  { %v955_v43 = vadd.f32 %v954_v42, %v753_v40  ;;  %v956_v44 = vpop.f32.mrb[9].mxu0 }
 0x3e5   :  { %v957_v45 = vadd.f32 %v956_v44, %v757_v41  ;;  %v958_v46 = vpop.f32.mrb[10].mxu0 }
 0x3e6   :  { %962 = vst [vmem:[#allocation13 + $0x10] sm:$0xff] %v955_v43  ;;  %967 = vst [vmem:[%s966_s27] sm:$0xff] %v955_v43  ;;  %v959_v47 = vpop.f32.mrb[11].mxu0  ;;  %v2954_v46 = vld [vmem:[%s3521_s24 + $0x54] ss:$8 sps:$4 sm:$0xff]   ;;  %s1174_s27 = scalar_lea.vmem %s3729_s14, %s2470_s28 }
 0x3e7   :  { %963 = vst [vmem:[#allocation13 + $0x18] sm:$0xff] %v957_v45  ;;  %971 = vst [vmem:[%s970_s20] sm:$0xff] %v957_v45  ;;  %v2952_v47 = vld [vmem:[%s3521_s24 + $0x50] ss:$8 sps:$4 sm:$0xff]   ;;  %1525 = vmatprep.subr.bf16.mxu0 %v2954_v46  ;;  %s2522_s20 = sshll.u32 %s2521_s13, 3 }
 0x3e8   :  { %1526 = vmatpush1.bf16.msra.mxu0 %v2952_v47  ;;  %s1393_s30 = scalar_lea.vmem [#allocation2], %s2522_s20 }
 0x3ee   :  { %v973_v48 = vld [vmem:[#allocation2 + $0x10] sm:$0xff] }
 0x3ef   :  { %v974_v50 = vpack.c.bf16 %v973_v48, %v973_v48  ;;  %v2955_v48 = vld [vmem:[%s3521_s24 + $0x60] ss:$8 sps:$4 sm:$0xff]  }
 0x3f1   :  { %1121 = vmatmul.mubr.bf16.vlgmr.msra.gmra.mrb[4].mxu1 %v974_v50  ;;  %v2960_v50 = vld [vmem:[%s3521_s24 + $0x74] ss:$8 sps:$4 sm:$0xff]  }
 0x3f2   :  { %1348 = vmatpush1.bf16.msra.mxu1 %v2889_v49  ;;  %v2957_v49 = vld [vmem:[%s3521_s24 + $0x64] ss:$8 sps:$4 sm:$0xff]  }
 0x3f3   :  { %1349 = vmatprep.subr.bf16.mxu1 %v2894_v51  ;;  %1527 = vmatprep.subr.bf16.mxu0 %v2957_v49  ;;  %v2958_v51 = vld [vmem:[%s3521_s24 + $0x70] ss:$8 sps:$4 sm:$0xff]  }
 0x3f4   :  { %1528 = vmatpush1.bf16.msra.mxu0 %v2955_v48 }
 0x3f5   :  { %1529 = vmatprep.subr.bf16.mxu0 %v2960_v50 }
 0x3f6   :  { %1350 = vmatpush1.bf16.msra.mxu1 %v2892_v52  ;;  %v2963_v52 = vld [vmem:[%s3533_s26 + $0x4] ss:$8 sps:$4 sm:$0xff]  }
 0x3f7   :  { %1351 = vmatprep.subr.bf16.mxu1 %v2897_v53  ;;  %v1175_v53 = vld [vmem:[%s1174_s27] sm:$0x3] }
 0x3f8   :  { %1530 = vmatpush1.bf16.msra.mxu0 %v2958_v51 }
 0x3f9   :  { %1774 = vmatprep.subr.bf16.mxu0 %v2963_v52 }
 0x3fa   :  { %1352 = vmatpush1.bf16.msra.mxu1 %v2895_v54  ;;  %v1180_v54 = vrot.slane %v1175_v53, %v3384_v63 }
 0x3fb   :  { %1353 = vmatprep.subr.bf16.mxu1 %v2900_v55  ;;  %v1184_v55 = vrot.slane %v1175_v53, %v3386_v2 }
 0x3fe   :  { %1354 = vmatpush1.bf16.msra.mxu1 %v2898_v56 }
 0x3ff   :  { %1355 = vmatprep.subr.bf16.mxu1 %v2903_v57 }
 0x402   :  { %1356 = vmatpush1.bf16.msra.mxu1 %v2901_v58 }
 0x403   :  { %1357 = vmatprep.subr.bf16.mxu1 %v2906_v59 }
 0x406   :  { %1358 = vmatpush1.bf16.msra.mxu1 %v2904_v60 }
 0x407   :  { %1359 = vmatprep.subr.bf16.mxu1 %v2909_v62 }
 0x40a   :  { %1360 = vmatpush1.bf16.msra.mxu1 %v2907_v0 }
 0x40b   :  { %1361 = vmatprep.subr.bf16.mxu1 %v2912_v3  ;;  %v2961_v3 = vld [vmem:[%s3533_s26] ss:$8 sps:$4 sm:$0xff]  }
 0x40e   :  { %1362 = vmatpush1.bf16.msra.mxu1 %v2910_v4 }
 0x40f   :  { %1363 = vmatprep.subr.bf16.mxu1 %v2915_v5  ;;  %v2966_v5 = vld [vmem:[%s3533_s26 + $0x14] ss:$8 sps:$4 sm:$0xff]  }
 0x412   :  { %1364 = vmatpush1.bf16.msra.mxu1 %v2913_v6  ;;  %v2964_v6 = vld [vmem:[%s3533_s26 + $0x10] ss:$8 sps:$4 sm:$0xff]  }
 0x413   :  { %1365 = vmatprep.subr.bf16.mxu1 %v2918_v7  ;;  %v2969_v7 = vld [vmem:[%s3533_s26 + $0x24] ss:$8 sps:$4 sm:$0xff]  }
 0x416   :  { %1366 = vmatpush1.bf16.msra.mxu1 %v2916_v8  ;;  %v2967_v8 = vld [vmem:[%s3533_s26 + $0x20] ss:$8 sps:$4 sm:$0xff]  }
 0x417   :  { %1367 = vmatprep.subr.bf16.mxu1 %v2921_v9  ;;  %v2972_v9 = vld [vmem:[%s3533_s26 + $0x34] ss:$8 sps:$4 sm:$0xff]  }
 0x41a   :  { %1368 = vmatpush1.bf16.msra.mxu1 %v2919_v10  ;;  %v2970_v10 = vld [vmem:[%s3533_s26 + $0x30] ss:$8 sps:$4 sm:$0xff]  }
 0x41b   :  { %1369 = vmatprep.subr.bf16.mxu1 %v2924_v11  ;;  %v2975_v11 = vld [vmem:[%s3533_s26 + $0x44] ss:$8 sps:$4 sm:$0xff]  }
 0x41e   :  { %1370 = vmatpush1.bf16.msra.mxu1 %v2922_v12  ;;  %v2973_v12 = vld [vmem:[%s3533_s26 + $0x40] ss:$8 sps:$4 sm:$0xff]  }
 0x41f   :  { %1371 = vmatprep.subr.bf16.mxu1 %v2927_v13  ;;  %v2978_v13 = vld [vmem:[%s3533_s26 + $0x54] ss:$8 sps:$4 sm:$0xff]  }
 0x422   :  { %1372 = vmatpush1.bf16.msra.mxu1 %v2925_v14  ;;  %v2976_v14 = vld [vmem:[%s3533_s26 + $0x50] ss:$8 sps:$4 sm:$0xff]  }
 0x423   :  { %1373 = vmatprep.subr.bf16.mxu1 %v2930_v15  ;;  %v2981_v15 = vld [vmem:[%s3533_s26 + $0x64] ss:$8 sps:$4 sm:$0xff]  }
 0x426   :  { %1374 = vmatpush1.bf16.msra.mxu1 %v2928_v16  ;;  %v2979_v16 = vld [vmem:[%s3533_s26 + $0x60] ss:$8 sps:$4 sm:$0xff]  }
 0x427   :  { %1375 = vmatprep.subr.bf16.mxu1 %v2933_v17  ;;  %v2984_v17 = vld [vmem:[%s3533_s26 + $0x74] ss:$8 sps:$4 sm:$0xff]  }
 0x42a   :  { %1376 = vmatpush1.bf16.msra.mxu1 %v2931_v18  ;;  %v2982_v18 = vld [vmem:[%s3533_s26 + $0x70] ss:$8 sps:$4 sm:$0xff]  }
 0x42b   :  { %1377 = vmatprep.subr.bf16.mxu1 %v2936_v19  ;;  %v2987_v19 = vld [vmem:[%s3533_s26 + $0x84] ss:$8 sps:$4 sm:$0xff]  }
 0x42e   :  { %1378 = vmatpush1.bf16.msra.mxu1 %v2934_v20  ;;  %v2985_v20 = vld [vmem:[%s3533_s26 + $0x80] ss:$8 sps:$4 sm:$0xff]  }
 0x4c4   :  { %v1122_v34 = vpop.f32.mrb[4].mxu1 }
 0x4c5   :  { %v1123_v36 = vadd.f32 %v1122_v34, %v1001_v32  ;;  %v1124_v37 = vpop.f32.mrb[5].mxu1  ;;  %v3003_v32 = vld [vmem:[%s3533_s26 + $0xe0] ss:$8 sps:$4 sm:$0xff]   ;;  %v3006_v34 = vld [vmem:[%s3533_s26 + $0xf0] ss:$8 sps:$4 sm:$0xff]  }
 0x4c6   :  { %v1125_v38 = vadd.f32 %v1124_v37, %v1005_v33  ;;  %v1126_v39 = vpop.f32.mrb[6].mxu1  ;;  %v3008_v33 = vld [vmem:[%s3533_s26 + $0xf4] ss:$8 sps:$4 sm:$0xff]   ;;  %s1601_s26 = scalar_lea.vmem %s3729_s14, %s2528_s0 }
 0x4c7   :  { %vm1130_vm4 = vcmp.gt.f32.partialorder %v1123_v36, 0.0  ;;  %v1133_v1 = vmul.f32 %v1132_v35, %v1123_v36  ;;  %v1127_v40 = vpop.f32.mrb[7].mxu1  ;;  %v3011_v37 = vld [vmem:[%s3719_s4 + $0x10] sm:$0xff]   ;;  %v3013_v39 = vld [vmem:[%s3719_s4 + $0x20] sm:$0xff]  }
 0x4c8   :  { %vm1131_vm5 = vcmp.gt.f32.partialorder %v1125_v38, 0.0  ;;  %v1134_v41 = vmul.f32 %v1132_v35, %v1125_v38  ;;  %v3009_v35 = vld [vmem:[%s3719_s4] sm:$0xff]  }
 0x4c9   :  { %v1135_v42 = vsel %vm1130_vm4, %v1123_v36, %v1133_v1  ;;  %v3010_v36 = vld [vmem:[%s3719_s4 + $0x8] sm:$0xff]   ;;  %2649 = vmatprep.subr.bf16.mxu1 %v3009_v35  ;;  %v1423_v1 = vld [vmem:[%s1422_s19] sm:$0x3] }
 0x4ca   :  { %v1136_v43 = vsel %vm1131_vm5, %v1125_v38, %v1134_v41  ;;  %v1137_v45 = vpack.c.bf16 %v1135_v42, %v1135_v42  ;;  %v3012_v38 = vld [vmem:[%s3719_s4 + $0x18] sm:$0xff]   ;;  %v1428_v40 = vrot.slane %v1423_v1, %v3384_v63  ;;  %v1432_v41 = vrot.slane %v1423_v1, %v3386_v2 }
 0x4cb   :  { %v1138_v44 = vpack.c.bf16 %v1136_v43, %v1136_v43  ;;  %v1559_v43 = vstv %s1556_s10 }
 0x4cd   :  { %1379 = vmatprep.mubr.bf16.mxu1 %v1138_v44 }
 0x4ce   :  { %1380 = vmatmul.mubr.bf16.vlgmr.msra.gmra.mrb[8].mxu1 %v1137_v45 }
 0x4cf   :  { %2650 = vmatpush3.bf16.msra.mxu1 %v3009_v35 }
 0x4d0   :  { %2651 = vmatprep.subr.bf16.mxu1 %v3010_v36 }
 0x4d3   :  { %2652 = vmatpush3.bf16.msra.mxu1 %v3010_v36 }
 0x4d4   :  { %2653 = vmatprep.subr.bf16.mxu1 %v3011_v37 }
 0x4d7   :  { %2654 = vmatpush3.bf16.msra.mxu1 %v3011_v37 }
 0x4d8   :  { %2655 = vmatprep.subr.bf16.mxu1 %v3012_v38 }
 0x4db   :  { %2656 = vmatpush3.bf16.msra.mxu1 %v3012_v38 }
 0x4dc   :  { %2657 = vmatprep.subr.bf16.mxu1 %v3013_v39 }
 0x4df   :  { %2658 = vmatpush3.bf16.msra.mxu1 %v3013_v39 }
 0x5a1   :  { %v1381_v56 = vpop.f32.mrb[8].mxu1 }
 0x5a2   :  { %v1382_v57 = vadd.f32 %v1381_v56, %v1180_v54  ;;  %v1383_v58 = vpop.f32.mrb[9].mxu1  ;;  %v3015_v56 = vld [vmem:[%s3719_s4 + $0x30] sm:$0xff]  }
 0x5a3   :  { %v1384_v59 = vadd.f32 %v1383_v58, %v1184_v55  ;;  %v1385_v60 = vpop.f32.mrb[10].mxu1  ;;  %v3014_v55 = vld [vmem:[%s3719_s4 + $0x28] sm:$0xff]   ;;  %v3017_v58 = vld [vmem:[%s3721_s6] sm:$0xff]  }
 0x5a4   :  { %1389 = vst [vmem:[#allocation13 + $0x20] sm:$0xff] %v1382_v57  ;;  %v1386_v62 = vpop.f32.mrb[11].mxu1  ;;  %1394 = vst [vmem:[%s1393_s30] sm:$0xff] %v1382_v57  ;;  %2659 = vmatprep.subr.bf16.mxu1 %v3014_v55  ;;  %v3016_v57 = vld [vmem:[%s3719_s4 + $0x38] sm:$0xff]   ;;  %s2580_s4 = sshll.u32 %s2579_s23, 3 }
 0x5a5   :  { %1390 = vst [vmem:[#allocation13 + $0x28] sm:$0xff] %v1384_v59  ;;  %1398 = vst [vmem:[%s1397_s22] sm:$0xff] %v1384_v59  ;;  %2660 = vmatpush3.bf16.msra.mxu1 %v3014_v55  ;;  %v1602_v59 = vld [vmem:[%s1601_s26] sm:$0x3]  ;;  %s1820_s2 = scalar_lea.vmem [#allocation2], %s2580_s4 }
 0x5a6   :  { %2661 = vmatprep.subr.bf16.mxu1 %v3015_v56  ;;  %v1607_v60 = vrot.slane %v1602_v59, %v3384_v63  ;;  %v1611_v62 = vrot.slane %v1602_v59, %v3386_v2  ;;  %v3018_v2 = vld [vmem:[%s3721_s6 + $0x8] sm:$0xff]  }
 0x5a9   :  { %2662 = vmatpush3.bf16.msra.mxu1 %v3015_v56 }
 0x5aa   :  { %2663 = vmatprep.subr.bf16.mxu1 %v3016_v57 }
 0x5ac   :  { %v1400_v0 = vld [vmem:[#allocation2 + $0x18] sm:$0xff] }
 0x5ad   :  { %v1401_v4 = vpack.c.bf16 %v1400_v0, %v1400_v0  ;;  %2664 = vmatpush3.bf16.msra.mxu1 %v3016_v57 }
 0x5ae   :  { %2669 = vmatprep.subr.bf16.mxu1 %v3017_v58 }
 0x5af   :  { %1548 = vmatmul.mubr.bf16.vlgmr.msra.gmra.mrb[12].mxu0 %v1401_v4 }
 0x5b0   :  { %1775 = vmatpush1.bf16.msra.mxu0 %v2961_v3 }
 0x5b1   :  { %1776 = vmatprep.subr.bf16.mxu0 %v2966_v5 }
 0x5b4   :  { %1777 = vmatpush1.bf16.msra.mxu0 %v2964_v6 }
 0x5b5   :  { %1778 = vmatprep.subr.bf16.mxu0 %v2969_v7 }
 0x5b8   :  { %1779 = vmatpush1.bf16.msra.mxu0 %v2967_v8 }
 0x5b9   :  { %1780 = vmatprep.subr.bf16.mxu0 %v2972_v9 }
 0x5bc   :  { %1781 = vmatpush1.bf16.msra.mxu0 %v2970_v10 }
 0x5bd   :  { %1782 = vmatprep.subr.bf16.mxu0 %v2975_v11 }
 0x5c0   :  { %1783 = vmatpush1.bf16.msra.mxu0 %v2973_v12 }
 0x5c1   :  { %1784 = vmatprep.subr.bf16.mxu0 %v2978_v13  ;;  %v3019_v13 = vld [vmem:[%s3721_s6 + $0x10] sm:$0xff]  }
 0x5c4   :  { %1785 = vmatpush1.bf16.msra.mxu0 %v2976_v14  ;;  %v3020_v14 = vld [vmem:[%s3721_s6 + $0x18] sm:$0xff]  }
 0x5c5   :  { %1786 = vmatprep.subr.bf16.mxu0 %v2981_v15  ;;  %v3021_v15 = vld [vmem:[%s3721_s6 + $0x20] sm:$0xff]  }
 0x5c8   :  { %1787 = vmatpush1.bf16.msra.mxu0 %v2979_v16  ;;  %v3022_v16 = vld [vmem:[%s3721_s6 + $0x28] sm:$0xff]  }
 0x5c9   :  { %1788 = vmatprep.subr.bf16.mxu0 %v2984_v17  ;;  %v3023_v17 = vld [vmem:[%s3721_s6 + $0x30] sm:$0xff]  }
 0x5cc   :  { %1789 = vmatpush1.bf16.msra.mxu0 %v2982_v18  ;;  %v3024_v18 = vld [vmem:[%s3721_s6 + $0x38] sm:$0xff]  }
 0x5cd   :  { %1790 = vmatprep.subr.bf16.mxu0 %v2987_v19  ;;  %v3025_v19 = vld [vmem:[%s3723_s8] sm:$0xff]  }
 0x5d0   :  { %1791 = vmatpush1.bf16.msra.mxu0 %v2985_v20  ;;  %v3026_v20 = vld [vmem:[%s3723_s8 + $0x8] sm:$0xff]  }
 0x5d1   :  { %1792 = vmatprep.subr.bf16.mxu0 %v2990_v21  ;;  %v3027_v21 = vld [vmem:[%s3723_s8 + $0x10] sm:$0xff]  }
 0x5d4   :  { %1793 = vmatpush1.bf16.msra.mxu0 %v2988_v22  ;;  %v3028_v22 = vld [vmem:[%s3723_s8 + $0x18] sm:$0xff]  }
 0x5d5   :  { %1794 = vmatprep.subr.bf16.mxu0 %v2993_v23  ;;  %v3029_v23 = vld [vmem:[%s3723_s8 + $0x20] sm:$0xff]  }
 0x5d8   :  { %1795 = vmatpush1.bf16.msra.mxu0 %v2991_v24  ;;  %v2583_v24 = vld [vmem:[%s3720_s5] ss:$0 sm:$0xff] }
 0x5d9   :  { %1796 = vmatprep.subr.bf16.mxu0 %v2996_v25 }
 0x5dc   :  { %1797 = vmatpush1.bf16.msra.mxu0 %v2994_v26 }
 0x5dd   :  { %1798 = vmatprep.subr.bf16.mxu0 %v2999_v27 }
 0x5e0   :  { %1799 = vmatpush1.bf16.msra.mxu0 %v2997_v28 }
 0x5e1   :  { %1800 = vmatprep.subr.bf16.mxu0 %v3002_v29 }
 0x5e4   :  { %1801 = vmatpush1.bf16.msra.mxu0 %v3000_v30 }
 0x5e5   :  { %1802 = vmatprep.subr.bf16.mxu0 %v3005_v31 }
 0x5e8   :  { %1803 = vmatpush1.bf16.msra.mxu0 %v3003_v32 }
 0x5e9   :  { %1804 = vmatprep.subr.bf16.mxu0 %v3008_v33 }
 0x5ec   :  { %1805 = vmatpush1.bf16.msra.mxu0 %v3006_v34 }
 0x5ed   :  { %2689 = vmatprep.subr.bf16.mxu0 %v3025_v19 }
 0x682   :  { %v1549_v42 = vpop.f32.mrb[12].mxu0 }
 0x683   :  { %v1550_v44 = vadd.f32 %v1549_v42, %v1428_v40  ;;  %v1551_v45 = vpop.f32.mrb[13].mxu0 }
 0x684   :  { %v1552_v46 = vadd.f32 %v1551_v45, %v1432_v41  ;;  %v1553_v47 = vpop.f32.mrb[14].mxu0  ;;  %v3032_v45 = vld [vmem:[%s3723_s8 + $0x38] sm:$0xff]  }
 0x685   :  { %vm1557_vm6 = vcmp.gt.f32.partialorder %v1550_v44, 0.0  ;;  %v1560_v48 = vmul.f32 %v1559_v43, %v1550_v44  ;;  %v1554_v49 = vpop.f32.mrb[15].mxu0 }
 0x686   :  { %vm1558_vm7 = vcmp.gt.f32.partialorder %v1552_v46, 0.0  ;;  %v1561_v50 = vmul.f32 %v1559_v43, %v1552_v46  ;;  %v3030_v43 = vld [vmem:[%s3723_s8 + $0x28] sm:$0xff]  }
 0x687   :  { %v1562_v51 = vsel %vm1557_vm6, %v1550_v44, %v1560_v48  ;;  %v3031_v44 = vld [vmem:[%s3723_s8 + $0x30] sm:$0xff]   ;;  %v2093_v48 = vstv %s2601_s12 }
 0x688   :  { %v1563_v52 = vsel %vm1558_vm7, %v1552_v46, %v1561_v50  ;;  %v1564_v54 = vpack.c.bf16 %v1562_v51, %v1562_v51  ;;  %v2592_v46 = vld [vmem:[%s3722_s7] ss:$0 sm:$0xff] }
 0x689   :  { %v1565_v53 = vpack.c.bf16 %v1563_v52, %v1563_v52 }
 0x68b   :  { %1806 = vmatprep.mubr.bf16.mxu0 %v1565_v53 }
 0x68c   :  { %1807 = vmatmul.mubr.bf16.vlgmr.msra.gmra.mrb[16].mxu0 %v1564_v54 }
 0x68d   :  { %2690 = vmatpush3.bf16.msra.mxu0 %v3025_v19 }
 0x68e   :  { %2691 = vmatprep.subr.bf16.mxu0 %v3026_v20 }
 0x691   :  { %2692 = vmatpush3.bf16.msra.mxu0 %v3026_v20 }
 0x692   :  { %2693 = vmatprep.subr.bf16.mxu0 %v3027_v21 }
 0x695   :  { %2694 = vmatpush3.bf16.msra.mxu0 %v3027_v21 }
 0x696   :  { %2695 = vmatprep.subr.bf16.mxu0 %v3028_v22 }
 0x699   :  { %2696 = vmatpush3.bf16.msra.mxu0 %v3028_v22 }
 0x69a   :  { %2697 = vmatprep.subr.bf16.mxu0 %v3029_v23 }
 0x69d   :  { %2698 = vmatpush3.bf16.msra.mxu0 %v3029_v23 }
 0x69e   :  { %2699 = vmatprep.subr.bf16.mxu0 %v3030_v43 }
 0x6a1   :  { %2700 = vmatpush3.bf16.msra.mxu0 %v3030_v43 }
 0x6a2   :  { %2701 = vmatprep.subr.bf16.mxu0 %v3031_v44 }
 0x6a5   :  { %2702 = vmatpush3.bf16.msra.mxu0 %v3031_v44 }
 0x6a6   :  { %2703 = vmatprep.subr.bf16.mxu0 %v3032_v45 }
 0x6a9   :  { %2704 = vmatpush3.bf16.msra.mxu0 %v3032_v45 }
 0x75f   :  { %v1808_v0 = vpop.f32.mrb[16].mxu0 }
 0x760   :  { %v1809_v3 = vadd.f32 %v1808_v0, %v1607_v60  ;;  %v1810_v4 = vpop.f32.mrb[17].mxu0 }
 0x761   :  { %v1811_v5 = vadd.f32 %v1810_v4, %v1611_v62  ;;  %v1812_v6 = vpop.f32.mrb[18].mxu0 }
 0x762   :  { %1816 = vst [vmem:[#allocation13 + $0x30] sm:$0xff] %v1809_v3  ;;  %v1813_v7 = vpop.f32.mrb[19].mxu0  ;;  %1821 = vst [vmem:[%s1820_s2] sm:$0xff] %v1809_v3  ;;  %v2225_v6 = vand.u32 127, %v145_v61 }
 0x763   :  { %1817 = vst [vmem:[#allocation13 + $0x38] sm:$0xff] %v1811_v5  ;;  %1825 = vst [vmem:[%s1824_s15] sm:$0xff] %v1811_v5  ;;  %s1952_s15 = sld [smem:[#allocation9]]  ;;  %v2602_v7 = vld [vmem:[%s3724_s9] ss:$0 sm:$0xff]  ;;  %s3169_s9 = smov [#allocation13]  }
 0x764   :  { %vm2226_vm0 = vcmp.lt.s32.totalorder %v2225_v6, 3  ;;  %s2288_s21 = sshll.u32 %s3169_s9, 4  ;;  %s2289_s21 = int_to_ptr.vmem [resolvable:$true] %s2288_s21 }
 0x765   :  { %s3109_s30 = scalar_lea.vmem %s2289_s21, 1024  ;;  %p3114_p12 = scmp.lt.s32.totalorder %s2289_s21, %s2289_s21 }
 0x766   :  { %p3110_p11 = scmp.ne.s32.totalorder %s2289_s21, %s3109_s30  ;;  %p3115_p13 = scmp.lt.s32.totalorder %s3109_s30, %s3109_s30 }
 0x768   :  { %p3116_p0 = por %p3115_p13, %p3114_p12 }
 0x769   :  { %v1957_v26 = vstv %s1952_s15 }
 0x76a   :  { %v1826_v8 = vld [vmem:[#allocation2] sm:$0xff]  ;;  %v1827_v9 = vld [vmem:[#allocation2 + $0x8] sm:$0xff]  ;;  %v1828_v10 = vld [vmem:[#allocation2 + $0x10] sm:$0xff]  ;;  %p3117_p1 = pnand %p3116_p0, %p3110_p11 }
 0x76b   :  { %v1830_v63 = vpack.c.bf16 %v1827_v9, %v1826_v8  ;;  %v1829_v11 = vld [vmem:[#allocation2 + $0x18] sm:$0xff] }
 0x76c   :  { %v1831_v12 = vpack.c.bf16 %v1829_v11, %v1828_v10 }
 0x76d   :  { %2665 = vmatprep.mubr.bf16.mxu1 %v1830_v63 }
 0x76e   :  { %2666 = vmatmul.mubr.bf16.vlgmr.msra.gmra.mrb[12].mxu1 %v1831_v12 }
 0x76f   :  { %2670 = vmatpush3.bf16.msra.mxu1 %v3017_v58 }
 0x770   :  { %2671 = vmatprep.subr.bf16.mxu1 %v3018_v2 }
 0x773   :  { %2672 = vmatpush3.bf16.msra.mxu1 %v3018_v2 }
 0x774   :  { %2673 = vmatprep.subr.bf16.mxu1 %v3019_v13 }
 0x777   :  { %2674 = vmatpush3.bf16.msra.mxu1 %v3019_v13 }
 0x778   :  { %2675 = vmatprep.subr.bf16.mxu1 %v3020_v14 }
 0x77b   :  { %2676 = vmatpush3.bf16.msra.mxu1 %v3020_v14 }
 0x77c   :  { %2677 = vmatprep.subr.bf16.mxu1 %v3021_v15 }
 0x77f   :  { %2678 = vmatpush3.bf16.msra.mxu1 %v3021_v15 }
 0x780   :  { %2679 = vmatprep.subr.bf16.mxu1 %v3022_v16 }
 0x783   :  { %2680 = vmatpush3.bf16.msra.mxu1 %v3022_v16 }
 0x784   :  { %2681 = vmatprep.subr.bf16.mxu1 %v3023_v17 }
 0x787   :  { %2682 = vmatpush3.bf16.msra.mxu1 %v3023_v17 }
 0x788   :  { %2683 = vmatprep.subr.bf16.mxu1 %v3024_v18 }
 0x78b   :  { %2684 = vmatpush3.bf16.msra.mxu1 %v3024_v18 }
 0x841   :  { %v2667_v25 = vpop.f32.mrb[12].mxu1 }
 0x842   :  { %v1946_v27 = vadd.f32 %v2667_v25, %v2583_v24  ;;  %v1937_v28 = vpop.f32.mrb[13].mxu1 }
 0x843   :  { %v1938_v29 = vadd.f32 %v2583_v24, %v1937_v28  ;;  %v2668_v30 = vpop.f32.mrb[14].mxu1 }
 0x844   :  { %v1960_v31 = vmul.f32 %v1957_v26, %v1946_v27  ;;  %v1949_v32 = vadd.f32 %v2668_v30, %v2583_v24  ;;  %v1940_v33 = vpop.f32.mrb[15].mxu1  ;;  %vm1955_vm8 = vcmp.gt.f32.partialorder %v1946_v27, 0.0 }
 0x845   :  { %v1958_v34 = vmul.f32 %v1957_v26, %v1938_v29  ;;  %v1941_v35 = vadd.f32 %v2583_v24, %v1940_v33  ;;  %vm1953_vm9 = vcmp.gt.f32.partialorder %v1938_v29, 0.0 }
 0x846   :  { %vm1956_vm10 = vcmp.gt.f32.partialorder %v1949_v32, 0.0  ;;  %v1961_v36 = vmul.f32 %v1957_v26, %v1949_v32  ;;  %v1964_v38 = vsel %vm1955_vm8, %v1946_v27, %v1960_v31 }
 0x847   :  { %vm1954_vm11 = vcmp.gt.f32.partialorder %v1941_v35, 0.0  ;;  %v1959_v37 = vmul.f32 %v1957_v26, %v1941_v35  ;;  %v1962_v40 = vsel %vm1953_vm9, %v1938_v29, %v1958_v34 }
 0x848   :  { %v1965_v39 = vsel %vm1956_vm10, %v1949_v32, %v1961_v36 }
 0x849   :  { %v1967_v1 = vpack.c.bf16 %v1965_v39, %v1964_v38  ;;  %v1963_v41 = vsel %vm1954_vm11, %v1941_v35, %v1959_v37 }
 0x84a   :  { %v1966_v42 = vpack.c.bf16 %v1963_v41, %v1962_v40 }
 0x84c   :  { %2685 = vmatprep.mubr.bf16.mxu1 %v1966_v42 }
 0x84d   :  { %2686 = vmatmul.mubr.bf16.vlgmr.msra.gmra.mrb[16].mxu1 %v1967_v1 }
 0x920   :  { %v2687_v47 = vpop.f32.mrb[16].mxu1 }
 0x921   :  { %v2082_v49 = vadd.f32 %v2687_v47, %v2592_v46  ;;  %v2073_v50 = vpop.f32.mrb[17].mxu1 }
 0x922   :  { %v2074_v51 = vadd.f32 %v2592_v46, %v2073_v50  ;;  %v2688_v52 = vpop.f32.mrb[18].mxu1 }
 0x923   :  { %v2096_v53 = vmul.f32 %v2093_v48, %v2082_v49  ;;  %v2085_v54 = vadd.f32 %v2688_v52, %v2592_v46  ;;  %v2076_v55 = vpop.f32.mrb[19].mxu1  ;;  %vm2091_vm12 = vcmp.gt.f32.partialorder %v2082_v49, 0.0 }
 0x924   :  { %v2094_v56 = vmul.f32 %v2093_v48, %v2074_v51  ;;  %v2077_v57 = vadd.f32 %v2592_v46, %v2076_v55  ;;  %vm2089_vm13 = vcmp.gt.f32.partialorder %v2074_v51, 0.0 }
 0x925   :  { %vm2092_vm14 = vcmp.gt.f32.partialorder %v2085_v54, 0.0  ;;  %v2097_v58 = vmul.f32 %v2093_v48, %v2085_v54  ;;  %v2100_v60 = vsel %vm2091_vm12, %v2082_v49, %v2096_v53 }
 0x926   :  { %vm2090_vm15 = vcmp.gt.f32.partialorder %v2077_v57, 0.0  ;;  %v2095_v59 = vmul.f32 %v2093_v48, %v2077_v57  ;;  %v2098_v3 = vsel %vm2089_vm13, %v2074_v51, %v2094_v56 }
 0x927   :  { %v2101_v62 = vsel %vm2092_vm14, %v2085_v54, %v2097_v58 }
 0x928   :  { %v2103_v0 = vpack.c.bf16 %v2101_v62, %v2100_v60  ;;  %v2099_v4 = vsel %vm2090_vm15, %v2077_v57, %v2095_v59 }
 0x929   :  { %v2102_v5 = vpack.c.bf16 %v2099_v4, %v2098_v3 }
 0x92b   :  { %2705 = vmatprep.mubr.bf16.mxu0 %v2102_v5 }
 0x92c   :  { %2706 = vmatmul.mubr.bf16.vlgmr.msra.gmra.mrb[20].mxu0 %v2103_v0 }
 0x9ff   :  { %v2707_v8 = vpop.f32.mrb[20].mxu0 }
 0xa00   :  { %v2218_v9 = vadd.f32 %v2707_v8, %v2602_v7  ;;  %v2209_v10 = vpop.f32.mrb[21].mxu0 }
 0xa01   :  { %v2210_v63 = vadd.f32 %v2602_v7, %v2209_v10  ;;  %v2708_v11 = vpop.f32.mrb[22].mxu0 }
 0xa02   :  { %v2221_v12 = vadd.f32 %v2708_v11, %v2602_v7  ;;  %v2212_v2 = vpop.f32.mrb[23].mxu0  ;;  %v2229_v13 = vsel %vm2226_vm0, %v2218_v9, -inf }
 0xa03   :  { %v2213_v14 = vadd.f32 %v2602_v7, %v2212_v2  ;;  %2235 = vmax.xlane.f32.xlu1 %v2229_v13  ;;  %v2227_v15 = vsel %vm2226_vm0, %v2210_v63, -inf }
 0xa04   :  { %2231 = vmax.xlane.f32.xlu0 %v2227_v15  ;;  %v2230_v16 = vsel %vm2226_vm0, %v2221_v12, -inf }
 0xa05   :  { %v2228_v61 = vsel %vm2226_vm0, %v2213_v14, -inf }
 0xa07   :  { %2237 = vmax.xlane.f32.xlu1 %v2230_v16 }
 0xa08   :  { %2233 = vmax.xlane.f32.xlu0 %v2228_v61 }
 0xa90   :  { %v2236_v17 = vpop.xlane.xlu1 %2235 }
 0xa91   :  { %v2241_v18 = vsub.f32 %v2229_v13, %v2236_v17  ;;  %v2232_v19 = vpop.xlane.xlu0 %2231 }
 0xa92   :  { %v2239_v20 = vsub.f32 %v2227_v15, %v2232_v19 }
 0xa93   :  { %v2247_v23 = vmul.f32 1.442695, %v2241_v18 }
 0xa94   :  { %v2243_v21 = vmul.f32 1.442695, %v2239_v20  ;;  %v2238_v22 = vpop.xlane.xlu1 %2237 }
 0xa95   :  { %v2234_v24 = vpop.xlane.xlu0 %2233  ;;  %v2242_v25 = vsub.f32 %v2230_v16, %v2238_v22 }
 0xa96   :  { %3033 = vpow2.f32 %v2243_v21  ;;  %v2240_v26 = vsub.f32 %v2228_v61, %v2234_v24 }
 0xa97   :  { %3035 = vpow2.f32 %v2247_v23  ;;  %v2249_v28 = vmul.f32 1.442695, %v2242_v25 }
 0xa98   :  { %v2245_v27 = vmul.f32 1.442695, %v2240_v26 }
 0xa9a   :  { %3037 = vpow2.f32 %v2245_v27 }
 0xa9b   :  { %3039 = vpow2.f32 %v2249_v28 }
 0xaa0   :  { %v3034_v29 = vpop.eup %3033 }
 0xaa1   :  { %2251 = vadd.xlane.f32.xlu0 %v3034_v29  ;;  %v3036_v30 = vpop.eup %3035 }
 0xaa4   :  { %v3038_v31 = vpop.eup %3037 }
 0xaa5   :  { %2255 = vadd.xlane.f32.xlu0 %v3036_v30  ;;  %2253 = vadd.xlane.f32.xlu1 %v3038_v31  ;;  %v3040_v32 = vpop.eup %3039 }
 0xaa9   :  { %2257 = vadd.xlane.f32.xlu1 %v3040_v32 }
 0xaaa   :  { %3120 = shalt.err (!%p3117_p1)
}
 0xaab   :  { %s3121_s24 = scalar_lea.hbm %s3732_s17, 1024 }
 0xaac   :  { %p3122_p2 = scmp.ne.s32.totalorder %s3732_s17, %s3121_s24  ;;  %p3125_p3 = scmp.lt.u32.totalorder %s3121_s24, %s3732_s17 }
 0xaae   :  { %p3127_p4 = pnand %p3125_p3, %p3122_p2 }
 0xab0   :  { %3130 = shalt.err (!%p3127_p4)
}
 0xab1   :  { %s3170_s26 = smov 256   ;;  %s3171_s6 = smov 16  }
 0xab2   :  { %2294 = dma.vmem_to_hbm [thread:$0]  %s2289_s21, 1024, %s3732_s17, [#allocation14], %s3170_s26, %s3170_s26, %s3171_s6  }
 0xab3   :  { %s3172_s2 = smov [#allocation12]  }
 0xab4   :  { %s2276_s15 = sshll.u32 %s3172_s2, 4  ;;  %s2277_s15 = int_to_ptr.vmem [resolvable:$true] %s2276_s15 }
 0xab5   :  { %s3131_s17 = scalar_lea.vmem %s2277_s15, 512  ;;  %p3136_p6 = scmp.lt.s32.totalorder %s2277_s15, %s2277_s15 }
 0xab6   :  { %p3132_p5 = scmp.ne.s32.totalorder %s2277_s15, %s3131_s17  ;;  %p3137_p7 = scmp.lt.s32.totalorder %s3131_s17, %s3131_s17 }
 0xab8   :  { %p3138_p8 = por %p3137_p7, %p3136_p6 }
 0xaba   :  { %p3139_p9 = pnand %p3138_p8, %p3132_p5 }
 0xb2e   :  { %v2252_v33 = vpop.xlane.xlu0 %2251 }
 0xb2f   :  { %3041 = vrcp.f32 %v2252_v33 }
 0xb32   :  { %v2254_v34 = vpop.xlane.xlu1 %2253  ;;  %v2256_v35 = vpop.xlane.xlu0 %2255 }
 0xb33   :  { %3043 = vrcp.f32 %v2254_v34 }
 0xb34   :  { %3045 = vrcp.f32 %v2256_v35 }
 0xb36   :  { %v2258_v36 = vpop.xlane.xlu1 %2257 }
 0xb37   :  { %3047 = vrcp.f32 %v2258_v36 }
 0xb39   :  { %v3042_v37 = vpop.eup %3041 }
 0xb3a   :  { %v2260_v38 = vmul.f32 %v3042_v37, %v3034_v29 }
 0xb3c   :  { %2267 = vst [vmem:[#allocation12] sm:$0xff] %v2260_v38 }
 0xb3d   :  { %v3044_v39 = vpop.eup %3043 }
 0xb3e   :  { %v3046_v1 = vpop.eup %3045  ;;  %v2262_v40 = vmul.f32 %v3044_v39, %v3038_v31 }
 0xb3f   :  { %v2264_v41 = vmul.f32 %v3046_v1, %v3036_v30 }
 0xb40   :  { %2268 = vst [vmem:[#allocation12 + $0x8] sm:$0xff] %v2262_v40 }
 0xb41   :  { %v3048_v42 = vpop.eup %3047  ;;  %2269 = vst [vmem:[#allocation12 + $0x10] sm:$0xff] %v2264_v41 }
 0xb42   :  { %v2266_v43 = vmul.f32 %v3048_v42, %v3040_v32 }
 0xb44   :  { %2270 = vst [vmem:[#allocation12 + $0x18] sm:$0xff] %v2266_v43 }
 0xb45   :  { %3142 = shalt.err (!%p3139_p9)
}
 0xb46   :  { %s3143_s5 = scalar_lea.hbm %s3731_s16, 512 }
 0xb47   :  { %p3144_p10 = scmp.ne.s32.totalorder %s3731_s16, %s3143_s5  ;;  %p3147_p11 = scmp.lt.u32.totalorder %s3143_s5, %s3731_s16 }
 0xb49   :  { %p3149_p12 = pnand %p3147_p11, %p3144_p10 }
 0xb4b   :  { %3152 = shalt.err (!%p3149_p12)
}
 0xb4c   :  { %s3173_s10 = smov 128   ;;  %s3174_s12 = smov 8  }
 0xb4d   :  { %2282 = dma.vmem_to_hbm [thread:$0]  %s2277_s15, 512, %s3731_s16, [#allocation4], %s3173_s10, %s3173_s10, %s3174_s12  }
 0xb4e   :  { %3159 = dma.done.wait [#allocation4], 512  }
 0xb4f   :  { %3160 = vsyncadd [#allocation4], 4294966784 }
 0xb50   :  { %3161 = dma.done.wait [#allocation14], 1024  }
 0xb51   :  { %3162 = vsyncadd [#allocation14], 4294966272 }
 0xb52   :  { %2301 = vsyncpa [#allocation4], 1 }
 0xb53   :  { %2302 = vsyncpa [#allocation14], 1 }
 0xb54   :  { %2303 = vsyncpa [#allocation5], 1 }
 0xb55   :  { %2304 = vsyncpa [#allocation7], 1 }
 0xb56   :  { %2305 = vsyncpa [#allocation10], 1 }

</bundles_post_ra>
